<compile_context>
chip_gen: v7x
topology: tpu7x:2x2x1
jax: 0.10.0
libtpu: 0.0.40
codegen_flags: <defaults>
</compile_context>

<pallas_src>
import functools

import jax
import jax.numpy as jnp
from jax.experimental import pallas as pl
from jax.experimental.pallas import tpu as pltpu

# ----------------------------- config ---------------------------------------
BATCH = 2
SEQ = 8
DIM_EMBED = 32
NUM_HEADS = 4
DIM_FFN = 64
NUM_LAYERS = 2
LN_EPS = 1e-5

VEC_ROWS = 8       # packed per-layer vector rows
VEC_LANES = 128    # lane-padded width of the packed-vector array


# ----------------------------- kernel ---------------------------------------
def encoder_kernel(x_ref, wqkv_ref, wo_ref, w1_ref, w2_ref, vec_ref, out_ref,
                   *, num_heads, num_layers, dim_ffn):
    S, D = x_ref.shape[1], x_ref.shape[2]
    H = num_heads
    dh = D // H
    scale = 1.0 / float(dh) ** 0.5

    x = x_ref[0]                                           # (S, D) f32

    for l in range(num_layers):                            # static unroll (fused layers)
        wqkv = wqkv_ref[l]                                 # (D, 3D)  bf16
        wo = wo_ref[l]                                     # (D, D)   bf16
        w1 = w1_ref[l]                                     # (D, F)   bf16
        w2 = w2_ref[l]                                     # (F, D)   bf16
        vecs = vec_ref[l]                                  # (8, 128) f32 packed vectors
        bqkv = vecs[0:1, 0:3 * D]                          # (1, 3D)
        bo = vecs[1:2, 0:D]
        ln1_g = vecs[2:3, 0:D]
        ln1_b = vecs[3:4, 0:D]
        b1 = vecs[4:5, 0:dim_ffn]
        b2 = vecs[5:6, 0:D]
        ln2_g = vecs[6:7, 0:D]
        ln2_b = vecs[7:8, 0:D]

        xb = x.astype(jnp.bfloat16)

        # ---- fused QKV projection: one MXU matmul + one bias add ----
        qkv = jnp.dot(xb, wqkv, preferred_element_type=jnp.float32) + bqkv   # (S, 3D) f32
        q = qkv[:, 0:D]
        k = qkv[:, D:2 * D]
        v = qkv[:, 2 * D:3 * D]

        # ---- multi-head attention: heads on a leading batch axis ----
        q3 = jnp.stack([q[:, h * dh:(h + 1) * dh] for h in range(H)], axis=0)  # (H,S,dh)
        k3 = jnp.stack([k[:, h * dh:(h + 1) * dh] for h in range(H)], axis=0)
        v3 = jnp.stack([v[:, h * dh:(h + 1) * dh] for h in range(H)], axis=0)

        scores = jnp.einsum('hqd,hkd->hqk',
                            q3.astype(jnp.bfloat16), k3.astype(jnp.bfloat16),
                            preferred_element_type=jnp.float32) * scale        # (H,S,S) f32
        scores = scores - jnp.max(scores, axis=-1, keepdims=True)
        p = jnp.exp(scores)
        p = p * pl.reciprocal(jnp.sum(p, axis=-1, keepdims=True), approx=True)
        ctx3 = jnp.einsum('hqk,hkd->hqd',
                          p.astype(jnp.bfloat16), v3.astype(jnp.bfloat16),
                          preferred_element_type=jnp.float32)                  # (H,S,dh)
        ctx = jnp.concatenate([ctx3[h] for h in range(H)], axis=-1)            # (S, D)

        attn = jnp.dot(ctx.astype(jnp.bfloat16), wo,
                       preferred_element_type=jnp.float32) + bo

        # ---- residual + LayerNorm1 (f32) ----
        x1 = x + attn
        mu1 = jnp.mean(x1, axis=-1, keepdims=True)
        var1 = jnp.mean((x1 - mu1) ** 2, axis=-1, keepdims=True)
        x1n = (x1 - mu1) * jax.lax.rsqrt(var1 + LN_EPS) * ln1_g + ln1_b

        # ---- feed-forward network: Linear -> ReLU -> Linear ----
        h1 = jnp.dot(x1n.astype(jnp.bfloat16), w1,
                     preferred_element_type=jnp.float32) + b1
        h1 = jnp.maximum(h1, 0.0)
        ffn = jnp.dot(h1.astype(jnp.bfloat16), w2,
                      preferred_element_type=jnp.float32) + b2

        # ---- residual + LayerNorm2 (f32) ----
        x2 = x1n + ffn
        mu2 = jnp.mean(x2, axis=-1, keepdims=True)
        var2 = jnp.mean((x2 - mu2) ** 2, axis=-1, keepdims=True)
        x = (x2 - mu2) * jax.lax.rsqrt(var2 + LN_EPS) * ln2_g + ln2_b

    out_ref[0] = x


# ----------------------------- wrapper ---------------------------------------
def _full_spec(shape):
    # Whole-array block, same block for every grid step.
    return pl.BlockSpec(shape, lambda b: (0,) * len(shape))


@jax.jit
def encoder_forward(x, wqkv, wo, w1, w2, vec):
    B, S, D = x.shape
    kernel = functools.partial(
        encoder_kernel,
        num_heads=NUM_HEADS,
        num_layers=wqkv.shape[0],
        dim_ffn=w1.shape[-1],
    )
    return pl.pallas_call(
        kernel,
        out_shape=jax.ShapeDtypeStruct((B, S, D), jnp.float32),
        grid_spec=pltpu.PrefetchScalarGridSpec(
            num_scalar_prefetch=0,
            grid=(B,),
            in_specs=[
                pl.BlockSpec((1, S, D), lambda b: (b, 0, 0)),
                _full_spec(wqkv.shape),
                _full_spec(wo.shape),
                _full_spec(w1.shape),
                _full_spec(w2.shape),
                _full_spec(vec.shape),
            ],
            out_specs=pl.BlockSpec((1, S, D), lambda b: (b, 0, 0)),
        ),
        compiler_params=pltpu.CompilerParams(
            dimension_semantics=("parallel",)),
    )(x, wqkv, wo, w1, w2, vec)


# ----------------------------- param init / packing --------------------------
def init_layer_params(key, dim_embed, dim_ffn):
    ks = jax.random.split(key, 12)

    def w(k, din, dout):
        return jax.random.normal(k, (din, dout), jnp.float32) * 0.05

    def b(k, dout):
        return jax.random.normal(k, (dout,), jnp.float32) * 0.02

    return dict(
        wq=w(ks[0], dim_embed, dim_embed), bq=b(ks[1], dim_embed),
        wk=w(ks[2], dim_embed, dim_embed), bk=b(ks[3], dim_embed),
        wv=w(ks[4], dim_embed, dim_embed), bv=b(ks[5], dim_embed),
        wo=w(ks[6], dim_embed, dim_embed), bo=b(ks[7], dim_embed),
        w1=w(ks[8], dim_embed, dim_ffn),   b1=b(ks[9], dim_ffn),
        w2=w(ks[10], dim_ffn, dim_embed),  b2=b(ks[11], dim_embed),
        ln1_g=jnp.ones((dim_embed,), jnp.float32),
        ln1_b=jnp.zeros((dim_embed,), jnp.float32),
        ln2_g=jnp.ones((dim_embed,), jnp.float32),
        ln2_b=jnp.zeros((dim_embed,), jnp.float32),
    )


def pack_params(layer_params):
    """Stack per-layer weights across layers; pack small vectors into one array."""
    wqkv = jnp.stack(
        [jnp.concatenate([p['wq'], p['wk'], p['wv']], axis=1) for p in layer_params]
    ).astype(jnp.bfloat16)                                   # (L, D, 3D)
    wo = jnp.stack([p['wo'] for p in layer_params]).astype(jnp.bfloat16)   # (L, D, D)
    w1 = jnp.stack([p['w1'] for p in layer_params]).astype(jnp.bfloat16)   # (L, D, F)
    w2 = jnp.stack([p['w2'] for p in layer_params]).astype(jnp.bfloat16)   # (L, F, D)

    def pad_row(v):
        return jnp.pad(v, (0, VEC_LANES - v.shape[0]))

    vec_layers = []
    for p in layer_params:
        rows = jnp.stack([
            pad_row(jnp.concatenate([p['bq'], p['bk'], p['bv']])),  # row 0: bqkv (3D)
            pad_row(p['bo']),                                       # row 1
            pad_row(p['ln1_g']),                                    # row 2
            pad_row(p['ln1_b']),                                    # row 3
            pad_row(p['b1']),                                       # row 4
            pad_row(p['b2']),                                       # row 5
            pad_row(p['ln2_g']),                                    # row 6
            pad_row(p['ln2_b']),                                    # row 7
        ])
        vec_layers.append(rows)
    vec = jnp.stack(vec_layers).astype(jnp.float32)          # (L, 8, 128)
    return wqkv, wo, w1, w2, vec


# ----------------------------- main -------------------------------------------
if __name__ == "__main__":
    key = jax.random.PRNGKey(0)
    k_x, k_p = jax.random.split(key)
    x = jax.random.normal(k_x, (BATCH, SEQ, DIM_EMBED), jnp.float32)

    layer_keys = jax.random.split(k_p, NUM_LAYERS)
    layer_params = [init_layer_params(k, DIM_EMBED, DIM_FFN) for k in layer_keys]
    wqkv, wo, w1, w2, vec = pack_params(layer_params)

    out = encoder_forward(x, wqkv, wo, w1, w2, vec)
    out = jax.block_until_ready(out)
    assert out.shape == (BATCH, SEQ, DIM_EMBED)
    assert jnp.all(jnp.isfinite(out))
    print("KERNEL_OK")
</pallas_src>

<mosaic_0001>
module attributes {stable_mosaic.version = 11 : i64} {
  func.func @encoder_kernel(%arg0: i32, %arg1: memref<1x8x32xf32, #tpu.memory_space<vmem>>, %arg2: memref<2x32x96xbf16, #tpu.memory_space<vmem>>, %arg3: memref<2x32x32xbf16, #tpu.memory_space<vmem>>, %arg4: memref<2x32x64xbf16, #tpu.memory_space<vmem>>, %arg5: memref<2x64x32xbf16, #tpu.memory_space<vmem>>, %arg6: memref<2x8x128xf32, #tpu.memory_space<vmem>>, %arg7: memref<1x8x32xf32, #tpu.memory_space<vmem>>) attributes {dimension_semantics = [#tpu.dimension_semantics<parallel>], iteration_bounds = array<i64: 2>, scalar_prefetch = 0 : i64, scratch_operands = 0 : i64, tpu.core_type = #tpu.core_type<tc>, window_params = [{transform_indices = @transform_0, window_bounds = array<i64: 1, 8, 32>}, {pipeline_mode = #tpu.pipeline_mode<synchronous>, transform_indices = @transform_1, window_bounds = array<i64: 2, 32, 96>}, {pipeline_mode = #tpu.pipeline_mode<synchronous>, transform_indices = @transform_2, window_bounds = array<i64: 2, 32, 32>}, {pipeline_mode = #tpu.pipeline_mode<synchronous>, transform_indices = @transform_3, window_bounds = array<i64: 2, 32, 64>}, {pipeline_mode = #tpu.pipeline_mode<synchronous>, transform_indices = @transform_4, window_bounds = array<i64: 2, 64, 32>}, {pipeline_mode = #tpu.pipeline_mode<synchronous>, transform_indices = @transform_5, window_bounds = array<i64: 2, 8, 128>}, {transform_indices = @transform_6, window_bounds = array<i64: 1, 8, 32>}]} {
    %c0 = arith.constant 0 : index
    %c0_0 = arith.constant 0 : index
    %c0_1 = arith.constant 0 : index
    %0 = vector.load %arg1[%c0, %c0_0, %c0_1] : memref<1x8x32xf32, #tpu.memory_space<vmem>>, vector<1x8x32xf32>
    %1 = vector.shape_cast %0 : vector<1x8x32xf32> to vector<8x32xf32>
    %c0_2 = arith.constant 0 : index
    %c0_3 = arith.constant 0 : index
    %c0_4 = arith.constant 0 : index
    %2 = vector.load %arg2[%c0_2, %c0_3, %c0_4] : memref<2x32x96xbf16, #tpu.memory_space<vmem>>, vector<1x32x96xbf16>
    %3 = vector.shape_cast %2 : vector<1x32x96xbf16> to vector<32x96xbf16>
    %c0_5 = arith.constant 0 : index
    %c0_6 = arith.constant 0 : index
    %c0_7 = arith.constant 0 : index
    %4 = vector.load %arg3[%c0_5, %c0_6, %c0_7] : memref<2x32x32xbf16, #tpu.memory_space<vmem>>, vector<1x32x32xbf16>
    %5 = vector.shape_cast %4 : vector<1x32x32xbf16> to vector<32x32xbf16>
    %c0_8 = arith.constant 0 : index
    %c0_9 = arith.constant 0 : index
    %c0_10 = arith.constant 0 : index
    %6 = vector.load %arg4[%c0_8, %c0_9, %c0_10] : memref<2x32x64xbf16, #tpu.memory_space<vmem>>, vector<1x32x64xbf16>
    %7 = vector.shape_cast %6 : vector<1x32x64xbf16> to vector<32x64xbf16>
    %c0_11 = arith.constant 0 : index
    %c0_12 = arith.constant 0 : index
    %c0_13 = arith.constant 0 : index
    %8 = vector.load %arg5[%c0_11, %c0_12, %c0_13] : memref<2x64x32xbf16, #tpu.memory_space<vmem>>, vector<1x64x32xbf16>
    %9 = vector.shape_cast %8 : vector<1x64x32xbf16> to vector<64x32xbf16>
    %c0_14 = arith.constant 0 : index
    %c0_15 = arith.constant 0 : index
    %c0_16 = arith.constant 0 : index
    %10 = vector.load %arg6[%c0_14, %c0_15, %c0_16] : memref<2x8x128xf32, #tpu.memory_space<vmem>>, vector<1x8x128xf32>
    %11 = vector.shape_cast %10 : vector<1x8x128xf32> to vector<8x128xf32>
    %12 = vector.extract_strided_slice %11 {offsets = [0, 0], sizes = [1, 96], strides = [1, 1]} : vector<8x128xf32> to vector<1x96xf32>
    %13 = vector.extract_strided_slice %11 {offsets = [1, 0], sizes = [1, 32], strides = [1, 1]} : vector<8x128xf32> to vector<1x32xf32>
    %14 = vector.extract_strided_slice %11 {offsets = [2, 0], sizes = [1, 32], strides = [1, 1]} : vector<8x128xf32> to vector<1x32xf32>
    %15 = vector.extract_strided_slice %11 {offsets = [3, 0], sizes = [1, 32], strides = [1, 1]} : vector<8x128xf32> to vector<1x32xf32>
    %16 = vector.extract_strided_slice %11 {offsets = [4, 0], sizes = [1, 64], strides = [1, 1]} : vector<8x128xf32> to vector<1x64xf32>
    %17 = vector.extract_strided_slice %11 {offsets = [5, 0], sizes = [1, 32], strides = [1, 1]} : vector<8x128xf32> to vector<1x32xf32>
    %18 = vector.extract_strided_slice %11 {offsets = [6, 0], sizes = [1, 32], strides = [1, 1]} : vector<8x128xf32> to vector<1x32xf32>
    %19 = vector.extract_strided_slice %11 {offsets = [7, 0], sizes = [1, 32], strides = [1, 1]} : vector<8x128xf32> to vector<1x32xf32>
    %20 = arith.truncf %1 : vector<8x32xf32> to vector<8x32xbf16>
    %cst = arith.constant dense<0.000000e+00> : vector<8x96xf32>
    %21 = tpu.matmul %20, %3, %cst {dimension_numbers = #tpu.dot_dimension_numbers<[1], [0], [0], [1], [0, 0, 1, 1], [], []>} : vector<8x32xbf16>, vector<32x96xbf16>, vector<8x96xf32> -> vector<8x96xf32>
    %22 = vector.broadcast %12 : vector<1x96xf32> to vector<8x96xf32>
    %23 = arith.addf %21, %22 : vector<8x96xf32>
    %24 = vector.extract_strided_slice %23 {offsets = [0, 0], sizes = [8, 32], strides = [1, 1]} : vector<8x96xf32> to vector<8x32xf32>
    %25 = vector.extract_strided_slice %23 {offsets = [0, 32], sizes = [8, 32], strides = [1, 1]} : vector<8x96xf32> to vector<8x32xf32>
    %26 = vector.extract_strided_slice %23 {offsets = [0, 64], sizes = [8, 32], strides = [1, 1]} : vector<8x96xf32> to vector<8x32xf32>
    %27 = vector.extract_strided_slice %24 {offsets = [0, 0], sizes = [8, 8], strides = [1, 1]} : vector<8x32xf32> to vector<8x8xf32>
    %28 = vector.extract_strided_slice %24 {offsets = [0, 8], sizes = [8, 8], strides = [1, 1]} : vector<8x32xf32> to vector<8x8xf32>
    %29 = vector.extract_strided_slice %24 {offsets = [0, 16], sizes = [8, 8], strides = [1, 1]} : vector<8x32xf32> to vector<8x8xf32>
    %30 = vector.extract_strided_slice %24 {offsets = [0, 24], sizes = [8, 8], strides = [1, 1]} : vector<8x32xf32> to vector<8x8xf32>
    %31 = vector.shape_cast %27 : vector<8x8xf32> to vector<1x8x8xf32>
    %32 = vector.shape_cast %28 : vector<8x8xf32> to vector<1x8x8xf32>
    %33 = vector.shape_cast %29 : vector<8x8xf32> to vector<1x8x8xf32>
    %34 = vector.shape_cast %30 : vector<8x8xf32> to vector<1x8x8xf32>
    %35 = tpu.concatenate %31, %32, %33, %34 in 0 : vector<1x8x8xf32>, vector<1x8x8xf32>, vector<1x8x8xf32>, vector<1x8x8xf32> -> vector<4x8x8xf32>
    %36 = vector.extract_strided_slice %25 {offsets = [0, 0], sizes = [8, 8], strides = [1, 1]} : vector<8x32xf32> to vector<8x8xf32>
    %37 = vector.extract_strided_slice %25 {offsets = [0, 8], sizes = [8, 8], strides = [1, 1]} : vector<8x32xf32> to vector<8x8xf32>
    %38 = vector.extract_strided_slice %25 {offsets = [0, 16], sizes = [8, 8], strides = [1, 1]} : vector<8x32xf32> to vector<8x8xf32>
    %39 = vector.extract_strided_slice %25 {offsets = [0, 24], sizes = [8, 8], strides = [1, 1]} : vector<8x32xf32> to vector<8x8xf32>
    %40 = vector.shape_cast %36 : vector<8x8xf32> to vector<1x8x8xf32>
    %41 = vector.shape_cast %37 : vector<8x8xf32> to vector<1x8x8xf32>
    %42 = vector.shape_cast %38 : vector<8x8xf32> to vector<1x8x8xf32>
    %43 = vector.shape_cast %39 : vector<8x8xf32> to vector<1x8x8xf32>
    %44 = tpu.concatenate %40, %41, %42, %43 in 0 : vector<1x8x8xf32>, vector<1x8x8xf32>, vector<1x8x8xf32>, vector<1x8x8xf32> -> vector<4x8x8xf32>
    %45 = vector.extract_strided_slice %26 {offsets = [0, 0], sizes = [8, 8], strides = [1, 1]} : vector<8x32xf32> to vector<8x8xf32>
    %46 = vector.extract_strided_slice %26 {offsets = [0, 8], sizes = [8, 8], strides = [1, 1]} : vector<8x32xf32> to vector<8x8xf32>
    %47 = vector.extract_strided_slice %26 {offsets = [0, 16], sizes = [8, 8], strides = [1, 1]} : vector<8x32xf32> to vector<8x8xf32>
    %48 = vector.extract_strided_slice %26 {offsets = [0, 24], sizes = [8, 8], strides = [1, 1]} : vector<8x32xf32> to vector<8x8xf32>
    %49 = vector.shape_cast %45 : vector<8x8xf32> to vector<1x8x8xf32>
    %50 = vector.shape_cast %46 : vector<8x8xf32> to vector<1x8x8xf32>
    %51 = vector.shape_cast %47 : vector<8x8xf32> to vector<1x8x8xf32>
    %52 = vector.shape_cast %48 : vector<8x8xf32> to vector<1x8x8xf32>
    %53 = tpu.concatenate %49, %50, %51, %52 in 0 : vector<1x8x8xf32>, vector<1x8x8xf32>, vector<1x8x8xf32>, vector<1x8x8xf32> -> vector<4x8x8xf32>
    %54 = arith.truncf %35 : vector<4x8x8xf32> to vector<4x8x8xbf16>
    %55 = arith.truncf %44 : vector<4x8x8xf32> to vector<4x8x8xbf16>
    "tpu.trace_start"() <{level = 10 : i32, message = "hqd,hkd->hqk"}> : () -> ()
    %cst_17 = arith.constant dense<0.000000e+00> : vector<4x8x8xf32>
    %56 = tpu.matmul %54, %55, %cst_17 {dimension_numbers = #tpu.dot_dimension_numbers<[2], [2], [1], [1], [0, 0, 0, 1, 1, 1], [0], [0]>} : vector<4x8x8xbf16>, vector<4x8x8xbf16>, vector<4x8x8xf32> -> vector<4x8x8xf32>
    "tpu.trace_stop"() : () -> ()
    %cst_18 = arith.constant 0.353553385 : f32
    %57 = vector.broadcast %cst_18 : f32 to vector<4x8x8xf32>
    %58 = arith.mulf %56, %57 : vector<4x8x8xf32>
    %cst_19 = arith.constant dense<0xFF800000> : vector<4x8xf32>
    %59 = vector.multi_reduction <maximumf>, %58, %cst_19 [2] : vector<4x8x8xf32> to vector<4x8xf32>
    %60 = vector.shape_cast %59 : vector<4x8xf32> to vector<4x8x1xf32>
    %61 = vector.broadcast %60 : vector<4x8x1xf32> to vector<4x8x8xf32>
    %62 = arith.subf %58, %61 : vector<4x8x8xf32>
    %63 = math.exp %62 : vector<4x8x8xf32>
    %cst_20 = arith.constant dense<0.000000e+00> : vector<4x8xf32>
    %64 = vector.multi_reduction <add>, %63, %cst_20 [2] : vector<4x8x8xf32> to vector<4x8xf32>
    %65 = vector.shape_cast %64 : vector<4x8xf32> to vector<4x8x1xf32>
    %66 = tpu.reciprocal %65 {approx = true} : vector<4x8x1xf32> -> vector<4x8x1xf32>
    %67 = vector.broadcast %66 : vector<4x8x1xf32> to vector<4x8x8xf32>
    %68 = arith.mulf %63, %67 : vector<4x8x8xf32>
    %69 = arith.truncf %68 : vector<4x8x8xf32> to vector<4x8x8xbf16>
    %70 = arith.truncf %53 : vector<4x8x8xf32> to vector<4x8x8xbf16>
    "tpu.trace_start"() <{level = 10 : i32, message = "hqk,hkd->hqd"}> : () -> ()
    %cst_21 = arith.constant dense<0.000000e+00> : vector<4x8x8xf32>
    %71 = tpu.matmul %69, %70, %cst_21 {dimension_numbers = #tpu.dot_dimension_numbers<[2], [1], [1], [2], [0, 0, 0, 1, 1, 2], [0], [0]>} : vector<4x8x8xbf16>, vector<4x8x8xbf16>, vector<4x8x8xf32> -> vector<4x8x8xf32>
    "tpu.trace_stop"() : () -> ()
    %72 = vector.extract_strided_slice %71 {offsets = [0, 0, 0], sizes = [1, 8, 8], strides = [1, 1, 1]} : vector<4x8x8xf32> to vector<1x8x8xf32>
    %73 = vector.shape_cast %72 : vector<1x8x8xf32> to vector<8x8xf32>
    %74 = vector.extract_strided_slice %71 {offsets = [1, 0, 0], sizes = [1, 8, 8], strides = [1, 1, 1]} : vector<4x8x8xf32> to vector<1x8x8xf32>
    %75 = vector.shape_cast %74 : vector<1x8x8xf32> to vector<8x8xf32>
    %76 = vector.extract_strided_slice %71 {offsets = [2, 0, 0], sizes = [1, 8, 8], strides = [1, 1, 1]} : vector<4x8x8xf32> to vector<1x8x8xf32>
    %77 = vector.shape_cast %76 : vector<1x8x8xf32> to vector<8x8xf32>
    %78 = vector.extract_strided_slice %71 {offsets = [3, 0, 0], sizes = [1, 8, 8], strides = [1, 1, 1]} : vector<4x8x8xf32> to vector<1x8x8xf32>
    %79 = vector.shape_cast %78 : vector<1x8x8xf32> to vector<8x8xf32>
    %80 = tpu.concatenate %73, %75, %77, %79 in 1 : vector<8x8xf32>, vector<8x8xf32>, vector<8x8xf32>, vector<8x8xf32> -> vector<8x32xf32>
    %81 = arith.truncf %80 : vector<8x32xf32> to vector<8x32xbf16>
    %cst_22 = arith.constant dense<0.000000e+00> : vector<8x32xf32>
    %82 = tpu.matmul %81, %5, %cst_22 {dimension_numbers = #tpu.dot_dimension_numbers<[1], [0], [0], [1], [0, 0, 1, 1], [], []>} : vector<8x32xbf16>, vector<32x32xbf16>, vector<8x32xf32> -> vector<8x32xf32>
    %83 = vector.broadcast %13 : vector<1x32xf32> to vector<8x32xf32>
    %84 = arith.addf %82, %83 : vector<8x32xf32>
    %85 = arith.addf %1, %84 : vector<8x32xf32>
    %cst_23 = arith.constant dense<0.000000e+00> : vector<8xf32>
    %86 = vector.multi_reduction <add>, %85, %cst_23 [1] : vector<8x32xf32> to vector<8xf32>
    %87 = vector.shape_cast %86 : vector<8xf32> to vector<8x1xf32>
    %cst_24 = arith.constant 3.200000e+01 : f32
    %88 = vector.broadcast %cst_24 : f32 to vector<8x1xf32>
    %89 = arith.divf %87, %88 : vector<8x1xf32>
    %90 = vector.broadcast %89 : vector<8x1xf32> to vector<8x32xf32>
    %91 = arith.subf %85, %90 : vector<8x32xf32>
    %92 = arith.mulf %91, %91 : vector<8x32xf32>
    %cst_25 = arith.constant dense<0.000000e+00> : vector<8xf32>
    %93 = vector.multi_reduction <add>, %92, %cst_25 [1] : vector<8x32xf32> to vector<8xf32>
    %94 = vector.shape_cast %93 : vector<8xf32> to vector<8x1xf32>
    %cst_26 = arith.constant 3.200000e+01 : f32
    %95 = vector.broadcast %cst_26 : f32 to vector<8x1xf32>
    %96 = arith.divf %94, %95 : vector<8x1xf32>
    %97 = vector.broadcast %89 : vector<8x1xf32> to vector<8x32xf32>
    %98 = arith.subf %85, %97 : vector<8x32xf32>
    %cst_27 = arith.constant 9.99999974E-6 : f32
    %99 = vector.broadcast %cst_27 : f32 to vector<8x1xf32>
    %100 = arith.addf %96, %99 : vector<8x1xf32>
    %101 = math.rsqrt %100 : vector<8x1xf32>
    %102 = vector.broadcast %101 : vector<8x1xf32> to vector<8x32xf32>
    %103 = arith.mulf %98, %102 : vector<8x32xf32>
    %104 = vector.broadcast %14 : vector<1x32xf32> to vector<8x32xf32>
    %105 = arith.mulf %103, %104 : vector<8x32xf32>
    %106 = vector.broadcast %15 : vector<1x32xf32> to vector<8x32xf32>
    %107 = arith.addf %105, %106 : vector<8x32xf32>
    %108 = arith.truncf %107 : vector<8x32xf32> to vector<8x32xbf16>
    %cst_28 = arith.constant dense<0.000000e+00> : vector<8x64xf32>
    %109 = tpu.matmul %108, %7, %cst_28 {dimension_numbers = #tpu.dot_dimension_numbers<[1], [0], [0], [1], [0, 0, 1, 1], [], []>} : vector<8x32xbf16>, vector<32x64xbf16>, vector<8x64xf32> -> vector<8x64xf32>
    %110 = vector.broadcast %16 : vector<1x64xf32> to vector<8x64xf32>
    %111 = arith.addf %109, %110 : vector<8x64xf32>
    %cst_29 = arith.constant 0.000000e+00 : f32
    %112 = vector.broadcast %cst_29 : f32 to vector<8x64xf32>
    %113 = arith.maximumf %111, %112 : vector<8x64xf32>
    %114 = arith.truncf %113 : vector<8x64xf32> to vector<8x64xbf16>
    %cst_30 = arith.constant dense<0.000000e+00> : vector<8x32xf32>
    %115 = tpu.matmul %114, %9, %cst_30 {dimension_numbers = #tpu.dot_dimension_numbers<[1], [0], [0], [1], [0, 0, 1, 1], [], []>} : vector<8x64xbf16>, vector<64x32xbf16>, vector<8x32xf32> -> vector<8x32xf32>
    %116 = vector.broadcast %17 : vector<1x32xf32> to vector<8x32xf32>
    %117 = arith.addf %115, %116 : vector<8x32xf32>
    %118 = arith.addf %107, %117 : vector<8x32xf32>
    %cst_31 = arith.constant dense<0.000000e+00> : vector<8xf32>
    %119 = vector.multi_reduction <add>, %118, %cst_31 [1] : vector<8x32xf32> to vector<8xf32>
    %120 = vector.shape_cast %119 : vector<8xf32> to vector<8x1xf32>
    %cst_32 = arith.constant 3.200000e+01 : f32
    %121 = vector.broadcast %cst_32 : f32 to vector<8x1xf32>
    %122 = arith.divf %120, %121 : vector<8x1xf32>
    %123 = vector.broadcast %122 : vector<8x1xf32> to vector<8x32xf32>
    %124 = arith.subf %118, %123 : vector<8x32xf32>
    %125 = arith.mulf %124, %124 : vector<8x32xf32>
    %cst_33 = arith.constant dense<0.000000e+00> : vector<8xf32>
    %126 = vector.multi_reduction <add>, %125, %cst_33 [1] : vector<8x32xf32> to vector<8xf32>
    %127 = vector.shape_cast %126 : vector<8xf32> to vector<8x1xf32>
    %cst_34 = arith.constant 3.200000e+01 : f32
    %128 = vector.broadcast %cst_34 : f32 to vector<8x1xf32>
    %129 = arith.divf %127, %128 : vector<8x1xf32>
    %130 = vector.broadcast %122 : vector<8x1xf32> to vector<8x32xf32>
    %131 = arith.subf %118, %130 : vector<8x32xf32>
    %cst_35 = arith.constant 9.99999974E-6 : f32
    %132 = vector.broadcast %cst_35 : f32 to vector<8x1xf32>
    %133 = arith.addf %129, %132 : vector<8x1xf32>
    %134 = math.rsqrt %133 : vector<8x1xf32>
    %135 = vector.broadcast %134 : vector<8x1xf32> to vector<8x32xf32>
    %136 = arith.mulf %131, %135 : vector<8x32xf32>
    %137 = vector.broadcast %18 : vector<1x32xf32> to vector<8x32xf32>
    %138 = arith.mulf %136, %137 : vector<8x32xf32>
    %139 = vector.broadcast %19 : vector<1x32xf32> to vector<8x32xf32>
    %140 = arith.addf %138, %139 : vector<8x32xf32>
    %c1 = arith.constant 1 : index
    %c0_36 = arith.constant 0 : index
    %c0_37 = arith.constant 0 : index
    %141 = vector.load %arg2[%c1, %c0_36, %c0_37] : memref<2x32x96xbf16, #tpu.memory_space<vmem>>, vector<1x32x96xbf16>
    %142 = vector.shape_cast %141 : vector<1x32x96xbf16> to vector<32x96xbf16>
    %c1_38 = arith.constant 1 : index
    %c0_39 = arith.constant 0 : index
    %c0_40 = arith.constant 0 : index
    %143 = vector.load %arg3[%c1_38, %c0_39, %c0_40] : memref<2x32x32xbf16, #tpu.memory_space<vmem>>, vector<1x32x32xbf16>
    %144 = vector.shape_cast %143 : vector<1x32x32xbf16> to vector<32x32xbf16>
    %c1_41 = arith.constant 1 : index
    %c0_42 = arith.constant 0 : index
    %c0_43 = arith.constant 0 : index
    %145 = vector.load %arg4[%c1_41, %c0_42, %c0_43] : memref<2x32x64xbf16, #tpu.memory_space<vmem>>, vector<1x32x64xbf16>
    %146 = vector.shape_cast %145 : vector<1x32x64xbf16> to vector<32x64xbf16>
    %c1_44 = arith.constant 1 : index
    %c0_45 = arith.constant 0 : index
    %c0_46 = arith.constant 0 : index
    %147 = vector.load %arg5[%c1_44, %c0_45, %c0_46] : memref<2x64x32xbf16, #tpu.memory_space<vmem>>, vector<1x64x32xbf16>
    %148 = vector.shape_cast %147 : vector<1x64x32xbf16> to vector<64x32xbf16>
    %c1_47 = arith.constant 1 : index
    %c0_48 = arith.constant 0 : index
    %c0_49 = arith.constant 0 : index
    %149 = vector.load %arg6[%c1_47, %c0_48, %c0_49] : memref<2x8x128xf32, #tpu.memory_space<vmem>>, vector<1x8x128xf32>
    %150 = vector.shape_cast %149 : vector<1x8x128xf32> to vector<8x128xf32>
    %151 = vector.extract_strided_slice %150 {offsets = [0, 0], sizes = [1, 96], strides = [1, 1]} : vector<8x128xf32> to vector<1x96xf32>
    %152 = vector.extract_strided_slice %150 {offsets = [1, 0], sizes = [1, 32], strides = [1, 1]} : vector<8x128xf32> to vector<1x32xf32>
    %153 = vector.extract_strided_slice %150 {offsets = [2, 0], sizes = [1, 32], strides = [1, 1]} : vector<8x128xf32> to vector<1x32xf32>
    %154 = vector.extract_strided_slice %150 {offsets = [3, 0], sizes = [1, 32], strides = [1, 1]} : vector<8x128xf32> to vector<1x32xf32>
    %155 = vector.extract_strided_slice %150 {offsets = [4, 0], sizes = [1, 64], strides = [1, 1]} : vector<8x128xf32> to vector<1x64xf32>
    %156 = vector.extract_strided_slice %150 {offsets = [5, 0], sizes = [1, 32], strides = [1, 1]} : vector<8x128xf32> to vector<1x32xf32>
    %157 = vector.extract_strided_slice %150 {offsets = [6, 0], sizes = [1, 32], strides = [1, 1]} : vector<8x128xf32> to vector<1x32xf32>
    %158 = vector.extract_strided_slice %150 {offsets = [7, 0], sizes = [1, 32], strides = [1, 1]} : vector<8x128xf32> to vector<1x32xf32>
    %159 = arith.truncf %140 : vector<8x32xf32> to vector<8x32xbf16>
    %cst_50 = arith.constant dense<0.000000e+00> : vector<8x96xf32>
    %160 = tpu.matmul %159, %142, %cst_50 {dimension_numbers = #tpu.dot_dimension_numbers<[1], [0], [0], [1], [0, 0, 1, 1], [], []>} : vector<8x32xbf16>, vector<32x96xbf16>, vector<8x96xf32> -> vector<8x96xf32>
    %161 = vector.broadcast %151 : vector<1x96xf32> to vector<8x96xf32>
    %162 = arith.addf %160, %161 : vector<8x96xf32>
    %163 = vector.extract_strided_slice %162 {offsets = [0, 0], sizes = [8, 32], strides = [1, 1]} : vector<8x96xf32> to vector<8x32xf32>
    %164 = vector.extract_strided_slice %162 {offsets = [0, 32], sizes = [8, 32], strides = [1, 1]} : vector<8x96xf32> to vector<8x32xf32>
    %165 = vector.extract_strided_slice %162 {offsets = [0, 64], sizes = [8, 32], strides = [1, 1]} : vector<8x96xf32> to vector<8x32xf32>
    %166 = vector.extract_strided_slice %163 {offsets = [0, 0], sizes = [8, 8], strides = [1, 1]} : vector<8x32xf32> to vector<8x8xf32>
    %167 = vector.extract_strided_slice %163 {offsets = [0, 8], sizes = [8, 8], strides = [1, 1]} : vector<8x32xf32> to vector<8x8xf32>
    %168 = vector.extract_strided_slice %163 {offsets = [0, 16], sizes = [8, 8], strides = [1, 1]} : vector<8x32xf32> to vector<8x8xf32>
    %169 = vector.extract_strided_slice %163 {offsets = [0, 24], sizes = [8, 8], strides = [1, 1]} : vector<8x32xf32> to vector<8x8xf32>
    %170 = vector.shape_cast %166 : vector<8x8xf32> to vector<1x8x8xf32>
    %171 = vector.shape_cast %167 : vector<8x8xf32> to vector<1x8x8xf32>
    %172 = vector.shape_cast %168 : vector<8x8xf32> to vector<1x8x8xf32>
    %173 = vector.shape_cast %169 : vector<8x8xf32> to vector<1x8x8xf32>
    %174 = tpu.concatenate %170, %171, %172, %173 in 0 : vector<1x8x8xf32>, vector<1x8x8xf32>, vector<1x8x8xf32>, vector<1x8x8xf32> -> vector<4x8x8xf32>
    %175 = vector.extract_strided_slice %164 {offsets = [0, 0], sizes = [8, 8], strides = [1, 1]} : vector<8x32xf32> to vector<8x8xf32>
    %176 = vector.extract_strided_slice %164 {offsets = [0, 8], sizes = [8, 8], strides = [1, 1]} : vector<8x32xf32> to vector<8x8xf32>
    %177 = vector.extract_strided_slice %164 {offsets = [0, 16], sizes = [8, 8], strides = [1, 1]} : vector<8x32xf32> to vector<8x8xf32>
    %178 = vector.extract_strided_slice %164 {offsets = [0, 24], sizes = [8, 8], strides = [1, 1]} : vector<8x32xf32> to vector<8x8xf32>
    %179 = vector.shape_cast %175 : vector<8x8xf32> to vector<1x8x8xf32>
    %180 = vector.shape_cast %176 : vector<8x8xf32> to vector<1x8x8xf32>
    %181 = vector.shape_cast %177 : vector<8x8xf32> to vector<1x8x8xf32>
    %182 = vector.shape_cast %178 : vector<8x8xf32> to vector<1x8x8xf32>
    %183 = tpu.concatenate %179, %180, %181, %182 in 0 : vector<1x8x8xf32>, vector<1x8x8xf32>, vector<1x8x8xf32>, vector<1x8x8xf32> -> vector<4x8x8xf32>
    %184 = vector.extract_strided_slice %165 {offsets = [0, 0], sizes = [8, 8], strides = [1, 1]} : vector<8x32xf32> to vector<8x8xf32>
    %185 = vector.extract_strided_slice %165 {offsets = [0, 8], sizes = [8, 8], strides = [1, 1]} : vector<8x32xf32> to vector<8x8xf32>
    %186 = vector.extract_strided_slice %165 {offsets = [0, 16], sizes = [8, 8], strides = [1, 1]} : vector<8x32xf32> to vector<8x8xf32>
    %187 = vector.extract_strided_slice %165 {offsets = [0, 24], sizes = [8, 8], strides = [1, 1]} : vector<8x32xf32> to vector<8x8xf32>
    %188 = vector.shape_cast %184 : vector<8x8xf32> to vector<1x8x8xf32>
    %189 = vector.shape_cast %185 : vector<8x8xf32> to vector<1x8x8xf32>
    %190 = vector.shape_cast %186 : vector<8x8xf32> to vector<1x8x8xf32>
    %191 = vector.shape_cast %187 : vector<8x8xf32> to vector<1x8x8xf32>
    %192 = tpu.concatenate %188, %189, %190, %191 in 0 : vector<1x8x8xf32>, vector<1x8x8xf32>, vector<1x8x8xf32>, vector<1x8x8xf32> -> vector<4x8x8xf32>
    %193 = arith.truncf %174 : vector<4x8x8xf32> to vector<4x8x8xbf16>
    %194 = arith.truncf %183 : vector<4x8x8xf32> to vector<4x8x8xbf16>
    "tpu.trace_start"() <{level = 10 : i32, message = "hqd,hkd->hqk"}> : () -> ()
    %cst_51 = arith.constant dense<0.000000e+00> : vector<4x8x8xf32>
    %195 = tpu.matmul %193, %194, %cst_51 {dimension_numbers = #tpu.dot_dimension_numbers<[2], [2], [1], [1], [0, 0, 0, 1, 1, 1], [0], [0]>} : vector<4x8x8xbf16>, vector<4x8x8xbf16>, vector<4x8x8xf32> -> vector<4x8x8xf32>
    "tpu.trace_stop"() : () -> ()
    %cst_52 = arith.constant 0.353553385 : f32
    %196 = vector.broadcast %cst_52 : f32 to vector<4x8x8xf32>
    %197 = arith.mulf %195, %196 : vector<4x8x8xf32>
    %cst_53 = arith.constant dense<0xFF800000> : vector<4x8xf32>
    %198 = vector.multi_reduction <maximumf>, %197, %cst_53 [2] : vector<4x8x8xf32> to vector<4x8xf32>
    %199 = vector.shape_cast %198 : vector<4x8xf32> to vector<4x8x1xf32>
    %200 = vector.broadcast %199 : vector<4x8x1xf32> to vector<4x8x8xf32>
    %201 = arith.subf %197, %200 : vector<4x8x8xf32>
    %202 = math.exp %201 : vector<4x8x8xf32>
    %cst_54 = arith.constant dense<0.000000e+00> : vector<4x8xf32>
    %203 = vector.multi_reduction <add>, %202, %cst_54 [2] : vector<4x8x8xf32> to vector<4x8xf32>
    %204 = vector.shape_cast %203 : vector<4x8xf32> to vector<4x8x1xf32>
    %205 = tpu.reciprocal %204 {approx = true} : vector<4x8x1xf32> -> vector<4x8x1xf32>
    %206 = vector.broadcast %205 : vector<4x8x1xf32> to vector<4x8x8xf32>
    %207 = arith.mulf %202, %206 : vector<4x8x8xf32>
    %208 = arith.truncf %207 : vector<4x8x8xf32> to vector<4x8x8xbf16>
    %209 = arith.truncf %192 : vector<4x8x8xf32> to vector<4x8x8xbf16>
    "tpu.trace_start"() <{level = 10 : i32, message = "hqk,hkd->hqd"}> : () -> ()
    %cst_55 = arith.constant dense<0.000000e+00> : vector<4x8x8xf32>
    %210 = tpu.matmul %208, %209, %cst_55 {dimension_numbers = #tpu.dot_dimension_numbers<[2], [1], [1], [2], [0, 0, 0, 1, 1, 2], [0], [0]>} : vector<4x8x8xbf16>, vector<4x8x8xbf16>, vector<4x8x8xf32> -> vector<4x8x8xf32>
    "tpu.trace_stop"() : () -> ()
    %211 = vector.extract_strided_slice %210 {offsets = [0, 0, 0], sizes = [1, 8, 8], strides = [1, 1, 1]} : vector<4x8x8xf32> to vector<1x8x8xf32>
    %212 = vector.shape_cast %211 : vector<1x8x8xf32> to vector<8x8xf32>
    %213 = vector.extract_strided_slice %210 {offsets = [1, 0, 0], sizes = [1, 8, 8], strides = [1, 1, 1]} : vector<4x8x8xf32> to vector<1x8x8xf32>
    %214 = vector.shape_cast %213 : vector<1x8x8xf32> to vector<8x8xf32>
    %215 = vector.extract_strided_slice %210 {offsets = [2, 0, 0], sizes = [1, 8, 8], strides = [1, 1, 1]} : vector<4x8x8xf32> to vector<1x8x8xf32>
    %216 = vector.shape_cast %215 : vector<1x8x8xf32> to vector<8x8xf32>
    %217 = vector.extract_strided_slice %210 {offsets = [3, 0, 0], sizes = [1, 8, 8], strides = [1, 1, 1]} : vector<4x8x8xf32> to vector<1x8x8xf32>
    %218 = vector.shape_cast %217 : vector<1x8x8xf32> to vector<8x8xf32>
    %219 = tpu.concatenate %212, %214, %216, %218 in 1 : vector<8x8xf32>, vector<8x8xf32>, vector<8x8xf32>, vector<8x8xf32> -> vector<8x32xf32>
    %220 = arith.truncf %219 : vector<8x32xf32> to vector<8x32xbf16>
    %cst_56 = arith.constant dense<0.000000e+00> : vector<8x32xf32>
    %221 = tpu.matmul %220, %144, %cst_56 {dimension_numbers = #tpu.dot_dimension_numbers<[1], [0], [0], [1], [0, 0, 1, 1], [], []>} : vector<8x32xbf16>, vector<32x32xbf16>, vector<8x32xf32> -> vector<8x32xf32>
    %222 = vector.broadcast %152 : vector<1x32xf32> to vector<8x32xf32>
    %223 = arith.addf %221, %222 : vector<8x32xf32>
    %224 = arith.addf %140, %223 : vector<8x32xf32>
    %cst_57 = arith.constant dense<0.000000e+00> : vector<8xf32>
    %225 = vector.multi_reduction <add>, %224, %cst_57 [1] : vector<8x32xf32> to vector<8xf32>
    %226 = vector.shape_cast %225 : vector<8xf32> to vector<8x1xf32>
    %cst_58 = arith.constant 3.200000e+01 : f32
    %227 = vector.broadcast %cst_58 : f32 to vector<8x1xf32>
    %228 = arith.divf %226, %227 : vector<8x1xf32>
    %229 = vector.broadcast %228 : vector<8x1xf32> to vector<8x32xf32>
    %230 = arith.subf %224, %229 : vector<8x32xf32>
    %231 = arith.mulf %230, %230 : vector<8x32xf32>
    %cst_59 = arith.constant dense<0.000000e+00> : vector<8xf32>
    %232 = vector.multi_reduction <add>, %231, %cst_59 [1] : vector<8x32xf32> to vector<8xf32>
    %233 = vector.shape_cast %232 : vector<8xf32> to vector<8x1xf32>
    %cst_60 = arith.constant 3.200000e+01 : f32
    %234 = vector.broadcast %cst_60 : f32 to vector<8x1xf32>
    %235 = arith.divf %233, %234 : vector<8x1xf32>
    %236 = vector.broadcast %228 : vector<8x1xf32> to vector<8x32xf32>
    %237 = arith.subf %224, %236 : vector<8x32xf32>
    %cst_61 = arith.constant 9.99999974E-6 : f32
    %238 = vector.broadcast %cst_61 : f32 to vector<8x1xf32>
    %239 = arith.addf %235, %238 : vector<8x1xf32>
    %240 = math.rsqrt %239 : vector<8x1xf32>
    %241 = vector.broadcast %240 : vector<8x1xf32> to vector<8x32xf32>
    %242 = arith.mulf %237, %241 : vector<8x32xf32>
    %243 = vector.broadcast %153 : vector<1x32xf32> to vector<8x32xf32>
    %244 = arith.mulf %242, %243 : vector<8x32xf32>
    %245 = vector.broadcast %154 : vector<1x32xf32> to vector<8x32xf32>
    %246 = arith.addf %244, %245 : vector<8x32xf32>
    %247 = arith.truncf %246 : vector<8x32xf32> to vector<8x32xbf16>
    %cst_62 = arith.constant dense<0.000000e+00> : vector<8x64xf32>
    %248 = tpu.matmul %247, %146, %cst_62 {dimension_numbers = #tpu.dot_dimension_numbers<[1], [0], [0], [1], [0, 0, 1, 1], [], []>} : vector<8x32xbf16>, vector<32x64xbf16>, vector<8x64xf32> -> vector<8x64xf32>
    %249 = vector.broadcast %155 : vector<1x64xf32> to vector<8x64xf32>
    %250 = arith.addf %248, %249 : vector<8x64xf32>
    %cst_63 = arith.constant 0.000000e+00 : f32
    %251 = vector.broadcast %cst_63 : f32 to vector<8x64xf32>
    %252 = arith.maximumf %250, %251 : vector<8x64xf32>
    %253 = arith.truncf %252 : vector<8x64xf32> to vector<8x64xbf16>
    %cst_64 = arith.constant dense<0.000000e+00> : vector<8x32xf32>
    %254 = tpu.matmul %253, %148, %cst_64 {dimension_numbers = #tpu.dot_dimension_numbers<[1], [0], [0], [1], [0, 0, 1, 1], [], []>} : vector<8x64xbf16>, vector<64x32xbf16>, vector<8x32xf32> -> vector<8x32xf32>
    %255 = vector.broadcast %156 : vector<1x32xf32> to vector<8x32xf32>
    %256 = arith.addf %254, %255 : vector<8x32xf32>
    %257 = arith.addf %246, %256 : vector<8x32xf32>
    %cst_65 = arith.constant dense<0.000000e+00> : vector<8xf32>
    %258 = vector.multi_reduction <add>, %257, %cst_65 [1] : vector<8x32xf32> to vector<8xf32>
    %259 = vector.shape_cast %258 : vector<8xf32> to vector<8x1xf32>
    %cst_66 = arith.constant 3.200000e+01 : f32
    %260 = vector.broadcast %cst_66 : f32 to vector<8x1xf32>
    %261 = arith.divf %259, %260 : vector<8x1xf32>
    %262 = vector.broadcast %261 : vector<8x1xf32> to vector<8x32xf32>
    %263 = arith.subf %257, %262 : vector<8x32xf32>
    %264 = arith.mulf %263, %263 : vector<8x32xf32>
    %cst_67 = arith.constant dense<0.000000e+00> : vector<8xf32>
    %265 = vector.multi_reduction <add>, %264, %cst_67 [1] : vector<8x32xf32> to vector<8xf32>
    %266 = vector.shape_cast %265 : vector<8xf32> to vector<8x1xf32>
    %cst_68 = arith.constant 3.200000e+01 : f32
    %267 = vector.broadcast %cst_68 : f32 to vector<8x1xf32>
    %268 = arith.divf %266, %267 : vector<8x1xf32>
    %269 = vector.broadcast %261 : vector<8x1xf32> to vector<8x32xf32>
    %270 = arith.subf %257, %269 : vector<8x32xf32>
    %cst_69 = arith.constant 9.99999974E-6 : f32
    %271 = vector.broadcast %cst_69 : f32 to vector<8x1xf32>
    %272 = arith.addf %268, %271 : vector<8x1xf32>
    %273 = math.rsqrt %272 : vector<8x1xf32>
    %274 = vector.broadcast %273 : vector<8x1xf32> to vector<8x32xf32>
    %275 = arith.mulf %270, %274 : vector<8x32xf32>
    %276 = vector.broadcast %157 : vector<1x32xf32> to vector<8x32xf32>
    %277 = arith.mulf %275, %276 : vector<8x32xf32>
    %278 = vector.broadcast %158 : vector<1x32xf32> to vector<8x32xf32>
    %279 = arith.addf %277, %278 : vector<8x32xf32>
    %c0_70 = arith.constant 0 : index
    %c0_71 = arith.constant 0 : index
    %c0_72 = arith.constant 0 : index
    %280 = vector.load %arg7[%c0_70, %c0_71, %c0_72] : memref<1x8x32xf32, #tpu.memory_space<vmem>>, vector<1x8x32xf32>
    %281 = vector.shape_cast %280 : vector<1x8x32xf32> to vector<8x32xf32>
    %282 = vector.shape_cast %279 : vector<8x32xf32> to vector<1x8x32xf32>
    tpu.vector_store %arg7[%c0_70, %c0_71, %c0_72], %282 {strides = array<i32>} : memref<1x8x32xf32, #tpu.memory_space<vmem>>, vector<1x8x32xf32>,
    return
  }
  func.func @transform_0(%arg0: i32) -> (i32, i32, i32) {
    %c0_i32 = arith.constant 0 : i32
    %c0_i32_0 = arith.constant 0 : i32
    %c0_i32_1 = arith.constant 0 : i32
    return %arg0, %c0_i32, %c0_i32_0 : i32, i32, i32
  }
  func.func @transform_1(%arg0: i32) -> (i32, i32, i32) {
    %c0_i32 = arith.constant 0 : i32
    %c0_i32_0 = arith.constant 0 : i32
    %c0_i32_1 = arith.constant 0 : i32
    %c0_i32_2 = arith.constant 0 : i32
    return %c0_i32, %c0_i32_0, %c0_i32_1 : i32, i32, i32
  }
  func.func @transform_2(%arg0: i32) -> (i32, i32, i32) {
    %c0_i32 = arith.constant 0 : i32
    %c0_i32_0 = arith.constant 0 : i32
    %c0_i32_1 = arith.constant 0 : i32
    %c0_i32_2 = arith.constant 0 : i32
    return %c0_i32, %c0_i32_0, %c0_i32_1 : i32, i32, i32
  }
  func.func @transform_3(%arg0: i32) -> (i32, i32, i32) {
    %c0_i32 = arith.constant 0 : i32
    %c0_i32_0 = arith.constant 0 : i32
    %c0_i32_1 = arith.constant 0 : i32
    %c0_i32_2 = arith.constant 0 : i32
    return %c0_i32, %c0_i32_0, %c0_i32_1 : i32, i32, i32
  }
  func.func @transform_4(%arg0: i32) -> (i32, i32, i32) {
    %c0_i32 = arith.constant 0 : i32
    %c0_i32_0 = arith.constant 0 : i32
    %c0_i32_1 = arith.constant 0 : i32
    %c0_i32_2 = arith.constant 0 : i32
    return %c0_i32, %c0_i32_0, %c0_i32_1 : i32, i32, i32
  }
  func.func @transform_5(%arg0: i32) -> (i32, i32, i32) {
    %c0_i32 = arith.constant 0 : i32
    %c0_i32_0 = arith.constant 0 : i32
    %c0_i32_1 = arith.constant 0 : i32
    %c0_i32_2 = arith.constant 0 : i32
    return %c0_i32, %c0_i32_0, %c0_i32_1 : i32, i32, i32
  }
  func.func @transform_6(%arg0: i32) -> (i32, i32, i32) {
    %c0_i32 = arith.constant 0 : i32
    %c0_i32_0 = arith.constant 0 : i32
    %c0_i32_1 = arith.constant 0 : i32
    return %arg0, %c0_i32, %c0_i32_0 : i32, i32, i32
  }
}

</mosaic_0001>

<bundles_post_ra>
// kernel: encoder_forward.1
= control target key start
LH: loop header
LB: loop body
LE: loop exit
PB: predicated region body
PF: predicated region fallthrough
CT: control target
= control target key end

     0   :  { %11 = vsyncpa [#allocation3], 0  ;;  %s3030_s0 = inlined_call_operand.hbm [shape: f32[2,8,32], index: 0, kind: input, shape index: {}]   ;;  %s3031_s1 = inlined_call_operand.vmem [shape: bf16[2,32,96], index: 1, kind: input, shape index: {}]   ;;  %s3032_s2 = inlined_call_operand.vmem [shape: bf16[2,32,32], index: 2, kind: input, shape index: {}]   ;;  %s3033_s3 = inlined_call_operand.vmem [shape: bf16[2,32,64], index: 3, kind: input, shape index: {}]   ;;  %s3034_s4 = inlined_call_operand.vmem [shape: bf16[2,64,32], index: 4, kind: input, shape index: {}]   ;;  %s3035_s5 = inlined_call_operand.vmem [shape: f32[2,8,128], index: 5, kind: input, shape index: {}]   ;;  %s3036_s6 = inlined_call_operand.hbm [shape: f32[2,8,32], index: 6, kind: output, shape index: {}]  }
   0x1   :  { %13 = vsyncpa [#allocation3 + $0x1], 0 }
   0x2   :  { %14 = vsyncpa [#allocation4], 0 }
   0x3   :  { %16 = vsyncpa [#allocation4 + $0x1], 0  ;;  %s2514_s21 = smov 0   ;;  %s2516_s22 = smov 0  }
   0x4   :  { %s2518_s23 = smov 0   ;;  %s2520_s24 = smov 0  }
   0x5 LB: > { %s2535_s25 = sadd.s32 4294967295, %s2465_s24   ;;  %s1948_s26 = sadd.s32 4294967294, %s2465_s24   ;;  %s2465_s24 = sphi %s2520_s24, %s3057_s24   ;;  %s2461_s23 = sphi %s2518_s23, %s3056_s23   ;;  %s2457_s22 = sphi %s2516_s22, %s3055_s22   ;;  %s2453_s21 = sphi %s2514_s21, %s3054_s21  }
   0x6   : > { %s2539_s27 = sadd.s32 1, %s2465_s24   ;;  %s29_s28 = sadd.s32 1, %s2461_s23 }
   0x7   : > { %s26_s29 = ssub.s32 %s2465_s24, %s2539_s27  ;;  %p36_p0 = scmp.ne.s32.totalorder %s2461_s23, %s2457_s22 }
   0x8   : > { %p27_p1 = scmp.eq.s32.totalorder %s26_s29, 0  ;;  %p37_p2 = scmp.eq.s32.totalorder %s2465_s24, 0 }
   0x9   : > { %p42_p3 = scmp.ne.s32.totalorder %s2457_s22, %s2453_s21  ;;  %p43_p4 = scmp.eq.s32.totalorder %s2535_s25, 0 }
   0xa   : > { %s2551_s30 = scalar_select %p27_p1, %s2461_s23, %s29_s28  }
   0xb   : > { %p2553_p5 = por %p37_p2, %p36_p0  ;;  %p2557_p6 = por %p43_p4, %p42_p3 }
   0xc   : > { %p171_p7 = scmp.eq.s32.totalorder %s2535_s25, 1  ;;  %p177_p8 = scmp.eq.s32.totalorder %s1948_s26, 1 }
   0xd   : > { %p2265_p10 = scmp.lt.s32.totalorder %s2465_s24, 2  ;;  %s212_s11 = sand.u32 1, %s2461_s23  }
   0xe   : > { %p2564_p11 = por %p171_p7, %p36_p0  ;;  %p2568_p12 = por %p177_p8, %p42_p3 }
   0xf   : > { %s1952_s12 = sshll.u32 %s2465_s24, 7  ;;  %s1951_s13 = sshll.u32 %s212_s11, 3 }
  0x10   : > { %s3043_s9 = scalar_select %p2564_p11, 1, 0 }
  0x11   : > { %s3044_s10 = scalar_select %p2568_p12, 1, 0 }
  0x12   : > { %s2577_s16 = scalar_lea.hbm %s3030_s0, %s1952_s12  ;;  %s216_s17 = scalar_lea.vmem [#allocation2], %s1951_s13 }
  0x13   : > { %s223_s18 = sshll.u32 %s216_s17, 4  ;;  %p2581_p13 = pnand %p2265_p10, %p2553_p5  ;;  %s2585_s18 = int_to_ptr.vmem [resolvable:$true] %s223_s18 }
  0x14   : > { %s213_s20 = scalar_lea.sflag [#allocation3], %s212_s11  ;;  %s2369_s26 = scalar_lea.hbm %s2577_s16, 128 }
  0x15   : > { %p2370_p2 = scmp.ne.s32.totalorder %s2577_s16, %s2369_s26  ;;  %p2371_p3 = pneg %p2581_p13 }
  0x16   : > { %s2374_s7 = scalar_lea.hbm %s3030_s0, 256  ;;  %p2375_p5 = scmp.lt.u32.totalorder %s2577_s16, %s3030_s0 }
  0x17   : > { %p2372_p4 = pnand %p2371_p3, %p2370_p2  ;;  %p2376_p8 = scmp.lt.u32.totalorder %s2374_s7, %s2369_s26 }
  0x18   : > { %p2378_p9 = scmp.lt.u32.totalorder %s2369_s26, %s2577_s16 }
  0x19   : > { %p2373_p7 = pneg %p2372_p4  ;;  %p2377_p10 = por %p2376_p8, %p2375_p5 }
  0x1b   : > { %p2379_p0 = por %p2378_p9, %p2377_p10 }
  0x1d   : > { %p2380_p1 = pnand %p2379_p0, %p2373_p7 }
  0x1f   : > { %2383 = shalt.err (!%p2380_p1)
}
  0x20   : > { %s2384_s11 = scalar_lea.vmem %s2585_s18, 128  ;;  %s2467_s14 = smov [#allocation2]  }
  0x21   : > { %p2385_p2 = scmp.ne.s32.totalorder %s2585_s18, %s2384_s11  ;;  %s2389_s15 = sshll.u32 %s2467_s14, 4  ;;  %s2390_s15 = int_to_ptr.vmem [resolvable:$false] %s2389_s15 }
  0x22   : > { %s2391_s17 = scalar_lea.vmem %s2390_s15, 256  ;;  %p2392_p11 = scmp.lt.s32.totalorder %s2585_s18, %s2390_s15 }
  0x23   : > { %p2387_p4 = pnand %p2385_p2, %p2371_p3  ;;  %p2393_p5 = scmp.lt.s32.totalorder %s2391_s17, %s2384_s11 }
  0x25   : > { %p2388_p12 = pneg %p2387_p4  ;;  %p2394_p8 = por %p2393_p5, %p2392_p11 }
  0x27   : > { %p2395_p9 = pnand %p2394_p8, %p2388_p12 }
  0x29   : > { %2398 = shalt.err (!%p2395_p9)
}
  0x2a   : > { %2260 = dma.hbm_to_vmem [thread:$0]  (!%p2581_p13), %s2577_s16, 128, %s2585_s18, %s213_s20  }
  0x2b   : > { %p3046_p0 = scmp.lt.s32.totalorder %s2465_s24, 3  ;;  %p3047_p1 = scmp.ge.s32.totalorder %s2465_s24, 1 }
  0x2d   : > { %p229_p3 = pnand %p3047_p1, %p3046_p0 }
  0x2e   : > { %s2619_s26 = sand.u32 (!%p229_p3), 1, %s2457_s22  }
  0x2f   : > { %232 = sbr.rel (%p229_p3) target bundleno = 5281 (0x14a1), region = 44  ;;  %s3038_s28 = sshll.u32 (!%p229_p3), %s2619_s26, 3 }
  0x30   : > { %s235_s29 = scalar_lea.sflag (!%p229_p3), [#allocation3], %s2619_s26  ;;  %s238_s19 = scalar_lea.vmem (!%p229_p3), [#allocation2], %s3038_s28 }
  0x36   : > { %2444 = dma.done.wait (%p2557_p6), %s235_s29, 128  }
  0x37   : > { %2446 = vsyncadd (%p2557_p6), %s235_s29, 4294967168  ;;  %v2468_v0 = vmov 0.0   ;;  %vm2469_vm0 = vmmov 0   ;;  %v2309_v1 = vld [vmem:[%s3031_s1] sm:$0xff]   ;;  %v2310_v2 = vld [vmem:[%s3031_s1 + $0x8] sm:$0xff]   ;;  %vm307_vm1 = vcmask 261120   ;;  %v291_v5 = vlaneseq }
  0x38   : > { %2085 = vmatprep.subr.bf16.mxu1 %v2468_v0  ;;  %2089 = vmatprep.mubr.msk.bf16.mxu1 %vm2469_vm0, %v2468_v0  ;;  %v2641_v3 = vld [vmem:[%s238_s19] sm:$0xff]  ;;  %s2470_s13 = smov 104   ;;  %s2471_s11 = smov 120   ;;  %vm368_vm2 = vcmask 64512   ;;  %vm619_vm3 = vcmask 1043456   ;;  %vm820_vm4 = vcmask 130048  }
  0x39   : > { %2099 = vmatprep.subr.bf16.mxu0 %v2468_v0  ;;  %2101 = vmatprep.mubr.msk.bf16.mxu0 %vm2469_vm0, %v2468_v0  ;;  %v290_v4 = vpack.c.bf16 %v2641_v3, %v2641_v3  ;;  %v2650_v6 = vshrl.u32 %v291_v5, 7  ;;  %v2656_v8 = vld [vmem:[%s3035_s5] sm:$0xff]  ;;  %s2472_s14 = smov 112   ;;  %s2473_s15 = smov 96   ;;  %vm822_vm5 = vcmask 195584   ;;  %vm999_vm6 = vcmask 523264  }
  0x3a   : > { %2086 = vmatpush3.bf16.msra.mxu1 %v2309_v1  ;;  %s2474_s17 = smov 64   ;;  %s2475_s20 = smov 8  }
  0x3b   : > { %2087 = vmatprep.subr.bf16.mxu1 %v2468_v0  ;;  %v293_v7 = vsub.s32 0, %v2650_v6  ;;  %s3040_s8 = smov 16   ;;  %s3039_s7 = smov 24  }
  0x3c   : > { %s1865_s18 = scalar_lea.sflag [#allocation4], %s2619_s26  ;;  %p3051_p11 = scmp.ne.s32.totalorder %s3043_s9, 0 }
  0x3d   : > { %v294_v9 = vrot.slane %v2656_v8, %v293_v7 }
  0x3e   : > { %2088 = vmatpush3.bf16.msra.mxu1 %v2310_v2 }
  0x3f   : > { %2093 = vmatprep.subr.bf16.mxu1 %v2468_v0 }
  0x41   : > { %2090 = vmatmul.mubr.msk.bf16.vlgmr.msra.gmra.mrb[0].mxu1 %vm307_vm1, %v290_v4 }
  0x42   : > { %2095 = vmatprep.mubr.msk.bf16.mxu1 %vm2469_vm0, %v2468_v0 }
 0x114   : > { %v345_v10 = vpop.f32.mrb[0].mxu1 }
 0x115   : > { %v346_v11 = vadd.f32 %v345_v10, %v294_v9  ;;  %v2091_v12 = vpop.f32.mrb[1].mxu1 }
 0x116   : > { %v348_v13 = vpop.f32.mrb[2].mxu1 }
 0x117   : > { %358 = vrot.lane.b32.xlu1 %v346_v11, %s2470_s13  ;;  %352 = vrot.lane.b32.xlu0 %v346_v11, %s2471_s11  ;;  %v2092_v14 = vpop.f32.mrb[3].mxu1  ;;  %v2663_v15 = vpack.c.bf16 %v346_v11, %v346_v11 }
 0x11b   : > { %355 = vrot.lane.b32.xlu0 %v346_v11, %s2472_s14  ;;  %366 = vrot.lane.b32.xlu1 %v2663_v15, %s2473_s15 }
 0x189   : > { %v359_v16 = vpop.permute.xlu1 %358  ;;  %v353_v17 = vpop.permute.xlu0 %352 }
 0x18a   : > { %v362_v18 = vpack.c.bf16 %v353_v17, %v353_v17  ;;  %v2669_v21 = vpack.c.bf16 %v359_v16, %v359_v16 }
 0x18c   : > { %416 = vrot.lane.b32.xlu0 %v362_v18, %s2473_s15 }
 0x18d   : > { %v356_v19 = vpop.permute.xlu0 %355  ;;  %v367_v20 = vpop.permute.xlu1 %366 }
 0x18e   : > { %v2671_v22 = vpack.c.bf16 %v356_v19, %v356_v19  ;;  %v373_v23 = vsel %vm368_vm2, %v367_v20, 0 }
 0x18f   : > { %2094 = vmatpush3.bf16.xpose.msra.mxu1 %v373_v23 }
 0x190   : > { %514 = vrot.lane.b32.xlu0 %v2669_v21, %s2473_s15  ;;  %465 = vrot.lane.b32.xlu1 %v2671_v22, %s2473_s15 }
 0x191   : > { %2105 = vmatprep.subr.bf16.mxu1 %v2468_v0 }
 0x196   : > { %2096 = vmatmul.mubr.msk.bf16.vlgmr.msra.gmra.mrb[4].mxu1 %vm368_vm2, %v2663_v15 }
 0x197   : > { %2107 = vmatprep.mubr.msk.bf16.mxu1 %vm2469_vm0, %v2468_v0 }
 0x1fe   : > { %v417_v24 = vpop.permute.xlu0 %416 }
 0x1ff   : > { %v422_v25 = vsel %vm368_vm2, %v417_v24, 0 }
 0x200   : > { %2100 = vmatpush3.bf16.xpose.msra.mxu0 %v422_v25 }
 0x201   : > { %2111 = vmatprep.subr.bf16.mxu0 %v2468_v0 }
 0x202   : > { %v466_v26 = vpop.permute.xlu1 %465  ;;  %v515_v28 = vpop.permute.xlu0 %514 }
 0x203   : > { %v471_v27 = vsel %vm368_vm2, %v466_v26, 0  ;;  %v520_v29 = vsel %vm368_vm2, %v515_v28, 0 }
 0x204   : > { %2106 = vmatpush3.bf16.xpose.msra.mxu1 %v471_v27 }
 0x205   : > { %2117 = vmatprep.subr.bf16.mxu1 %v2468_v0 }
 0x207   : > { %2102 = vmatmul.mubr.msk.bf16.vlgmr.msra.gmra.mrb[0].mxu0 %vm368_vm2, %v362_v18 }
 0x208   : > { %2112 = vmatpush3.bf16.xpose.msra.mxu0 %v520_v29  ;;  %2113 = vmatprep.mubr.msk.bf16.mxu0 %vm2469_vm0, %v2468_v0 }
 0x209   : > { %2123 = vmatprep.subr.bf16.mxu0 %v2468_v0 }
 0x20b   : > { %2108 = vmatmul.mubr.msk.bf16.vlgmr.msra.gmra.mrb[8].mxu1 %vm368_vm2, %v2671_v22 }
 0x20c   : > { %2119 = vmatprep.mubr.msk.bf16.mxu1 %vm2469_vm0, %v2468_v0 }
 0x20f   : > { %2114 = vmatmul.mubr.msk.bf16.vlgmr.msra.gmra.mrb[4].mxu0 %vm368_vm2, %v2669_v21 }
 0x210   : > { %2125 = vmatprep.mubr.msk.bf16.mxu0 %vm2469_vm0, %v2468_v0 }
 0x269   : > { %v409_v30 = vpop.f32.mrb[4].mxu1 }
 0x26a   : > { %v562_v31 = vmul.f32 0.35355338, %v409_v30  ;;  %v2097_v32 = vpop.f32.mrb[5].mxu1 }
 0x26b   : > { %v412_v33 = vpop.f32.mrb[6].mxu1 }
 0x26c   : > { %v2098_v34 = vpop.f32.mrb[7].mxu1  ;;  %v566_v35 = vsel %vm368_vm2, %v562_v31, -inf }
 0x26d   : > { %567 = vmax.xlane.f32.xlu1 %v566_v35 }
 0x2da   : > { %v458_v36 = vpop.f32.mrb[0].mxu0 }
 0x2db   : > { %v563_v37 = vmul.f32 0.35355338, %v458_v36  ;;  %v2103_v38 = vpop.f32.mrb[1].mxu0 }
 0x2dc   : > { %v461_v39 = vpop.f32.mrb[2].mxu0 }
 0x2dd   : > { %v2104_v40 = vpop.f32.mrb[3].mxu0  ;;  %v569_v41 = vsel %vm368_vm2, %v563_v37, -inf }
 0x2de   : > { %570 = vmax.xlane.f32.xlu0 %v569_v41  ;;  %v507_v42 = vpop.f32.mrb[8].mxu1 }
 0x2df   : > { %v564_v43 = vmul.f32 0.35355338, %v507_v42  ;;  %v2109_v44 = vpop.f32.mrb[9].mxu1 }
 0x2e0   : > { %v510_v45 = vpop.f32.mrb[10].mxu1  ;;  %v2312_v44 = vld [vmem:[%s3032_s2 + $0x8] sm:$0xff]  }
 0x2e1   : > { %v2110_v46 = vpop.f32.mrb[11].mxu1  ;;  %v572_v47 = vsel %vm368_vm2, %v564_v43, -inf }
 0x2e2   : > { %v556_v48 = vpop.f32.mrb[4].mxu0  ;;  %573 = vmax.xlane.f32.xlu0 %v572_v47 }
 0x2e3   : > { %v565_v49 = vmul.f32 0.35355338, %v556_v48  ;;  %v2115_v50 = vpop.f32.mrb[5].mxu0 }
 0x2e4   : > { %v559_v51 = vpop.f32.mrb[6].mxu0 }
 0x2e5   : > { %v2116_v52 = vpop.f32.mrb[7].mxu0  ;;  %v575_v53 = vsel %vm368_vm2, %v565_v49, -inf }
 0x2e6   : > { %576 = vmax.xlane.f32.xlu1 %v575_v53 }
 0x2f7   : > { %663 = vrot.lane.b32.xlu1 %v362_v18, %s2474_s17 }
 0x2f8   : > { %614 = vrot.lane.b32.xlu0 %v2663_v15, %s2474_s17 }
 0x2fa   : > { %v568_v54 = vpop.xlane.xlu1 %567 }
 0x2fb   : > { %v578_v55 = vsub.f32 %v562_v31, %v568_v54 }
 0x2fd   : > { %v582_v56 = vmul.f32 1.442695, %v578_v55 }
 0x2ff   : > { %2329 = vpow2.f32 %v582_v56 }
 0x309   : > { %v2330_v57 = vpop.eup %2329 }
 0x30a   : > { %v590_v58 = vsel %vm368_vm2, %v2330_v57, 0.0 }
 0x317   : > { %591 = vadd.xlane.f32.xlu0 %v590_v58 }
 0x36b   : > { %v571_v59 = vpop.xlane.xlu0 %570 }
 0x36c   : > { %v579_v60 = vsub.f32 %v563_v37, %v571_v59 }
 0x36e   : > { %v584_v61 = vmul.f32 1.442695, %v579_v60 }
 0x36f   : > { %v574_v62 = vpop.xlane.xlu0 %573 }
 0x370   : > { %2331 = vpow2.f32 %v584_v61  ;;  %v580_v63 = vsub.f32 %v564_v43, %v574_v62  ;;  %v2311_v43 = vld [vmem:[%s3032_s2] sm:$0xff]  }
 0x372   : > { %v586_v1 = vmul.f32 1.442695, %v580_v63 }
 0x373   : > { %v577_v2 = vpop.xlane.xlu1 %576  ;;  %v615_v4 = vpop.permute.xlu0 %614 }
 0x374   : > { %2333 = vpow2.f32 %v586_v1  ;;  %v581_v5 = vsub.f32 %v565_v49, %v577_v2  ;;  %v621_v9 = vsel %vm619_vm3, %v615_v4, 0  ;;  %v827_v1 = vsub.s32 1, %v2650_v6 }
 0x375   : > { %2118 = vmatpush3.bf16.msra.mxu1 %v621_v9 }
 0x376   : > { %v588_v10 = vmul.f32 1.442695, %v581_v5  ;;  %2129 = vmatprep.subr.bf16.mxu1 %v2468_v0  ;;  %v828_v2 = vrot.slane %v2656_v8, %v827_v1 }
 0x377   : > { %v664_v11 = vpop.permute.xlu1 %663 }
 0x378   : > { %2335 = vpow2.f32 %v588_v10  ;;  %v669_v12 = vsel %vm619_vm3, %v664_v11, 0 }
 0x379   : > { %2124 = vmatpush3.bf16.msra.mxu0 %v669_v12 }
 0x37a   : > { %v2332_v13 = vpop.eup %2331  ;;  %2135 = vmatprep.subr.bf16.mxu0 %v2468_v0 }
 0x37b   : > { %v593_v14 = vsel %vm368_vm2, %v2332_v13, 0.0 }
 0x37c   : > { %594 = vadd.xlane.f32.xlu1 %v593_v14 }
 0x37e   : > { %v2334_v15 = vpop.eup %2333 }
 0x37f   : > { %v596_v16 = vsel %vm368_vm2, %v2334_v15, 0.0 }
 0x380   : > { %597 = vadd.xlane.f32.xlu0 %v596_v16 }
 0x382   : > { %v2336_v17 = vpop.eup %2335 }
 0x383   : > { %v599_v18 = vsel %vm368_vm2, %v2336_v17, 0.0 }
 0x384   : > { %600 = vadd.xlane.f32.xlu1 %v599_v18 }
 0x395   : > { %711 = vrot.lane.b32.xlu1 %v2671_v22, %s2474_s17 }
 0x396   : > { %759 = vrot.lane.b32.xlu0 %v2669_v21, %s2474_s17 }
 0x3a4   : > { %v592_v19 = vpop.xlane.xlu0 %591 }
 0x3a5   : > { %2337 = vrcp.f32 %v592_v19  ;;  %v2313_v19 = vld [vmem:[%s3033_s3] sm:$0xff]  }
 0x3af   : > { %v2338_v20 = vpop.eup %2337 }
 0x3b0   : > { %v606_v23 = vmul.f32 %v2338_v20, %v2330_v57  ;;  %v2314_v20 = vld [vmem:[%s3033_s3 + $0x8] sm:$0xff]  }
 0x3b2   : > { %v610_v24 = vpack.c.bf16 %v606_v23, %v606_v23  ;;  %v2316_v23 = vld [vmem:[%s3034_s4 + $0x8] sm:$0xff]  }
 0x3b4   : > { %2120 = vmatmul.mubr.msk.bf16.vlgmr.msra.gmra.mrb[12].mxu1 %vm368_vm2, %v610_v24 }
 0x3b5   : > { %2131 = vmatprep.mubr.msk.bf16.mxu1 %vm2469_vm0, %v2468_v0 }
 0x409   : > { %v595_v25 = vpop.xlane.xlu1 %594 }
 0x40a   : > { %2339 = vrcp.f32 %v595_v25 }
 0x40d   : > { %v598_v26 = vpop.xlane.xlu0 %597 }
 0x40e   : > { %2341 = vrcp.f32 %v598_v26 }
 0x411   : > { %v601_v27 = vpop.xlane.xlu1 %600  ;;  %v760_v21 = vpop.permute.xlu0 %759 }
 0x412   : > { %2343 = vrcp.f32 %v601_v27  ;;  %v765_v34 = vsel %vm619_vm3, %v760_v21, 0  ;;  %v901_v27 = vsub.s32 2, %v2650_v6 }
 0x414   : > { %v2340_v22 = vpop.eup %2339 }
 0x415   : > { %v607_v28 = vmul.f32 %v2340_v22, %v2332_v13  ;;  %v712_v29 = vpop.permute.xlu1 %711  ;;  %v906_v22 = vsub.s32 3, %v2650_v6 }
 0x416   : > { %v717_v30 = vsel %vm619_vm3, %v712_v29, 0 }
 0x417   : > { %2130 = vmatpush3.bf16.msra.mxu1 %v717_v30  ;;  %v611_v31 = vpack.c.bf16 %v607_v28, %v607_v28  ;;  %v902_v28 = vrot.slane %v2656_v8, %v901_v27  ;;  %v907_v30 = vrot.slane %v2656_v8, %v906_v22 }
 0x418   : > { %v2342_v32 = vpop.eup %2341  ;;  %2141 = vmatprep.subr.bf16.mxu1 %v2468_v0 }
 0x419   : > { %v608_v33 = vmul.f32 %v2342_v32, %v2334_v15  ;;  %2126 = vmatmul.mubr.msk.bf16.vlgmr.msra.gmra.mrb[8].mxu0 %vm368_vm2, %v611_v31 }
 0x41a   : > { %2136 = vmatpush3.bf16.msra.mxu0 %v765_v34  ;;  %2137 = vmatprep.mubr.msk.bf16.mxu0 %vm2469_vm0, %v2468_v0  ;;  %v2317_v34 = vld [vmem:[%s3034_s4 + $0x10] sm:$0xff]  }
 0x41b   : > { %v612_v35 = vpack.c.bf16 %v608_v33, %v608_v33  ;;  %2149 = vmatprep.subr.bf16.mxu0 %v2468_v0 }
 0x41c   : > { %v2344_v36 = vpop.eup %2343 }
 0x41d   : > { %v609_v37 = vmul.f32 %v2344_v36, %v2336_v17  ;;  %2132 = vmatmul.mubr.msk.bf16.vlgmr.msra.gmra.mrb[16].mxu1 %vm368_vm2, %v612_v35  ;;  %v2318_v35 = vld [vmem:[%s3034_s4 + $0x18] sm:$0xff]   ;;  %v912_v36 = vsub.s32 4, %v2650_v6 }
 0x41e   : > { %2145 = vmatprep.mubr.msk.bf16.mxu1 %vm2469_vm0, %v2468_v0  ;;  %2142 = vmatpush3.bf16.msra.mxu1 %v2311_v43 }
 0x41f   : > { %v613_v38 = vpack.c.bf16 %v609_v37, %v609_v37  ;;  %2143 = vmatprep.subr.bf16.mxu1 %v2468_v0  ;;  %v913_v37 = vrot.slane %v2656_v8, %v912_v36 }
 0x421   : > { %2138 = vmatmul.mubr.msk.bf16.vlgmr.msra.gmra.mrb[12].mxu0 %vm368_vm2, %v613_v38 }
 0x422   : > { %2153 = vmatprep.mubr.msk.bf16.mxu0 %vm2469_vm0, %v2468_v0  ;;  %2144 = vmatpush3.bf16.msra.mxu1 %v2312_v44 }
 0x423   : > { %2157 = vmatprep.subr.bf16.mxu1 %v2468_v0  ;;  %2150 = vmatpush3.bf16.msra.mxu0 %v2313_v19 }
 0x424   : > { %2151 = vmatprep.subr.bf16.mxu0 %v2468_v0 }
 0x427   : > { %2152 = vmatpush3.bf16.msra.mxu0 %v2314_v20 }
 0x428   : > { %2169 = vmatprep.subr.bf16.mxu0 %v2468_v0 }
 0x487   : > { %v657_v39 = vpop.f32.mrb[12].mxu1 }
 0x488   : > { %v2121_v40 = vpop.f32.mrb[13].mxu1 }
 0x489   : > { %v660_v41 = vpop.f32.mrb[14].mxu1 }
 0x48a   : > { %v2122_v42 = vpop.f32.mrb[15].mxu1 }
 0x4ec   : > { %v705_v45 = vpop.f32.mrb[8].mxu0 }
 0x4ed   : > { %808 = vrot.lane.b32.xlu1 %v705_v45, %s2475_s20  ;;  %v2127_v46 = vpop.f32.mrb[9].mxu0  ;;  %v973_v45 = vsub.s32 5, %v2650_v6 }
 0x4ee   : > { %v708_v47 = vpop.f32.mrb[10].mxu0 }
 0x4ef   : > { %v2128_v48 = vpop.f32.mrb[11].mxu0  ;;  %v974_v46 = vrot.slane %v2656_v8, %v973_v45 }
 0x4f0   : > { %v753_v49 = vpop.f32.mrb[16].mxu1 }
 0x4f1   : > { %812 = vrot.lane.b32.xlu0 %v753_v49, %s3040_s8  ;;  %v2133_v50 = vpop.f32.mrb[17].mxu1 }
 0x4f2   : > { %v756_v51 = vpop.f32.mrb[18].mxu1 }
 0x4f3   : > { %v2134_v52 = vpop.f32.mrb[19].mxu1 }
 0x4f4   : > { %v801_v53 = vpop.f32.mrb[12].mxu0 }
 0x4f5   : > { %816 = vrot.lane.b32.xlu1 %v801_v53, %s3039_s7  ;;  %v2139_v54 = vpop.f32.mrb[13].mxu0  ;;  %s3049_s7 = smov 24  }
 0x4f6   : > { %v804_v55 = vpop.f32.mrb[14].mxu0 }
 0x4f7   : > { %v2140_v56 = vpop.f32.mrb[15].mxu0 }
 0x55f   : > { %v809_v57 = vpop.permute.xlu1 %808 }
 0x560   : > { %v819_v59 = vsel %vm368_vm2, %v657_v39, %v809_v57 }
 0x563   : > { %v813_v58 = vpop.permute.xlu0 %812 }
 0x564   : > { %v821_v60 = vsel %vm820_vm4, %v819_v59, %v813_v58  ;;  %v2319_v59 = vld [vmem:[%s3031_s1 + $0x10] sm:$0xff]  }
 0x567   : > { %v817_v61 = vpop.permute.xlu1 %816 }
 0x568   : > { %v823_v62 = vsel %vm822_vm5, %v821_v60, %v817_v61  ;;  %v2320_v60 = vld [vmem:[%s3031_s1 + $0x18] sm:$0xff]  }
 0x569   : > { %v824_v63 = vpack.c.bf16 %v823_v62, %v823_v62 }
 0x56b   : > { %2146 = vmatmul.mubr.msk.bf16.vlgmr.msra.gmra.mrb[20].mxu1 %vm307_vm1, %v824_v63 }
 0x56c   : > { %2165 = vmatprep.mubr.msk.bf16.mxu1 %vm2469_vm0, %v2468_v0 }
 0x63e   : > { %v878_v4 = vpop.f32.mrb[20].mxu1 }
 0x63f   : > { %v879_v5 = vadd.f32 %v878_v4, %v828_v2  ;;  %v2147_v9 = vpop.f32.mrb[21].mxu1  ;;  %v1059_v2 = vsub.s32 6, %v2650_v6  ;;  %v1064_v4 = vsub.s32 7, %v2650_v6 }
 0x640   : > { %v881_v10 = vpop.f32.mrb[22].mxu1 }
 0x641   : > { %v2148_v11 = vpop.f32.mrb[23].mxu1  ;;  %v884_v12 = vadd.f32 %v879_v5, %v2641_v3  ;;  %v2315_v3 = vld [vmem:[%s3034_s4] sm:$0xff]   ;;  %v1060_v5 = vrot.slane %v2656_v8, %v1059_v2 }
 0x642   : > { %2158 = vmatpush3.bf16.msra.mxu1 %v2315_v3  ;;  %v1065_v11 = vrot.slane %v2656_v8, %v1064_v4 }
 0x643   : > { %v885_v13 = vsel %vm307_vm1, %v884_v12, 0.0  ;;  %2159 = vmatprep.subr.bf16.mxu1 %v2468_v0 }
 0x644   : > { %886 = vadd.xlane.f32.xlu0 %v885_v13 }
 0x646   : > { %2160 = vmatpush3.bf16.msra.mxu1 %v2316_v23 }
 0x647   : > { %2161 = vmatprep.subr.bf16.mxu1 %v2468_v0 }
 0x64a   : > { %2162 = vmatpush3.bf16.msra.mxu1 %v2317_v34 }
 0x64b   : > { %2163 = vmatprep.subr.bf16.mxu1 %v2468_v0 }
 0x64e   : > { %2164 = vmatpush3.bf16.msra.mxu1 %v2318_v35 }
 0x64f   : > { %2183 = vmatprep.subr.bf16.mxu1 %v2468_v0 }
 0x6d1   : > { %v887_v14 = vpop.xlane.xlu0 %886 }
 0x6d2   : > { %v889_v15 = vmul.f32 0.03125, %v887_v14 }
 0x6d4   : > { %v890_v16 = vsub.f32 %v884_v12, %v889_v15  ;;  %v2833_v15 = vld [vmem:[%s3035_s5 + $0x8] sm:$0xff] }
 0x6d5   : > { %v1097_v8 = vrot.slane %v2833_v15, %v293_v7 }
 0x6d6   : > { %v891_v17 = vmul.f32 %v890_v16, %v890_v16 }
 0x6d8   : > { %v892_v18 = vsel %vm307_vm1, %v891_v17, 0.0 }
 0x6d9   : > { %893 = vadd.xlane.f32.xlu1 %v892_v18 }
 0x766   : > { %v894_v24 = vpop.xlane.xlu1 %893 }
 0x767   : > { %v895_v25 = vmul.f32 0.03125, %v894_v24 }
 0x769   : > { %v896_v26 = vadd.f32 1e-05, %v895_v25 }
 0x76b   : > { %2345 = vrsqrt.f32 %v896_v26 }
 0x775   : > { %v2346_v29 = vpop.eup %2345 }
 0x776   : > { %v898_v21 = vmul.f32 %v2346_v29, %v890_v16 }
 0x778   : > { %v903_v31 = vmul.f32 %v902_v28, %v898_v21 }
 0x77a   : > { %v908_v32 = vadd.f32 %v907_v30, %v903_v31 }
 0x77c   : > { %v909_v33 = vpack.c.bf16 %v908_v32, %v908_v32 }
 0x77e   : > { %2154 = vmatmul.mubr.msk.bf16.vlgmr.msra.gmra.mrb[16].mxu0 %vm307_vm1, %v909_v33 }
 0x77f   : > { %2173 = vmatprep.mubr.msk.bf16.mxu0 %vm2469_vm0, %v2468_v0  ;;  %2170 = vmatpush3.bf16.msra.mxu0 %v2319_v59 }
 0x780   : > { %2171 = vmatprep.subr.bf16.mxu0 %v2468_v0 }
 0x783   : > { %2172 = vmatpush3.bf16.msra.mxu0 %v2320_v60 }
 0x784   : > { %2177 = vmatprep.subr.bf16.mxu0 %v2468_v0 }
 0x851   : > { %v963_v38 = vpop.f32.mrb[16].mxu0 }
 0x852   : > { %v964_v39 = vadd.f32 %v963_v38, %v913_v37  ;;  %v2155_v40 = vpop.f32.mrb[17].mxu0 }
 0x853   : > { %v966_v41 = vpop.f32.mrb[18].mxu0 }
 0x854   : > { %v969_v42 = vmax.f32 %v964_v39, 0.0  ;;  %v2156_v43 = vpop.f32.mrb[19].mxu0 }
 0x856   : > { %v970_v44 = vpack.c.bf16 %v969_v42, %v969_v42 }
 0x858   : > { %2166 = vmatmul.mubr.msk.bf16.vlgmr.msra.gmra.mrb[24].mxu1 %vm999_vm6, %v970_v44 }
 0x859   : > { %2185 = vmatprep.mubr.msk.bf16.mxu1 %vm2469_vm0, %v2468_v0 }
 0x92b   : > { %v1037_v47 = vpop.f32.mrb[24].mxu1 }
 0x92c   : > { %v1038_v48 = vadd.f32 %v1037_v47, %v974_v46  ;;  %v2167_v49 = vpop.f32.mrb[25].mxu1 }
 0x92d   : > { %v1040_v50 = vpop.f32.mrb[26].mxu1 }
 0x92e   : > { %v2168_v51 = vpop.f32.mrb[27].mxu1  ;;  %v1043_v52 = vadd.f32 %v1038_v48, %v908_v32 }
 0x930   : > { %v1044_v53 = vsel %vm307_vm1, %v1043_v52, 0.0 }
 0x931   : > { %1045 = vadd.xlane.f32.xlu0 %v1044_v53 }
 0x9be   : > { %v1046_v54 = vpop.xlane.xlu0 %1045 }
 0x9bf   : > { %v1047_v55 = vmul.f32 0.03125, %v1046_v54 }
 0x9c1   : > { %v1048_v56 = vsub.f32 %v1043_v52, %v1047_v55 }
 0x9c3   : > { %v1049_v57 = vmul.f32 %v1048_v56, %v1048_v56 }
 0x9c5   : > { %v1050_v58 = vsel %vm307_vm1, %v1049_v57, 0.0 }
 0x9c6   : > { %1051 = vadd.xlane.f32.xlu0 %v1050_v58 }
 0xa53   : > { %v1052_v61 = vpop.xlane.xlu0 %1051 }
 0xa54   : > { %v1053_v62 = vmul.f32 0.03125, %v1052_v61 }
 0xa56   : > { %v1054_v63 = vadd.f32 1e-05, %v1053_v62 }
 0xa58   : > { %2347 = vrsqrt.f32 %v1054_v63 }
 0xa62   : > { %v2348_v9 = vpop.eup %2347 }
 0xa63   : > { %v1056_v10 = vmul.f32 %v2348_v9, %v1048_v56 }
 0xa65   : > { %v1061_v12 = vmul.f32 %v1060_v5, %v1056_v10 }
 0xa67   : > { %v2823_v13 = vadd.f32 %v1065_v11, %v1061_v12 }
 0xa69   : > { %v1093_v14 = vpack.c.bf16 %v2823_v13, %v2823_v13 }
 0xa6b   : > { %2174 = vmatmul.mubr.msk.bf16.vlgmr.msra.gmra.mrb[20].mxu0 %vm307_vm1, %v1093_v14 }
 0xa6c   : > { %2179 = vmatprep.mubr.msk.bf16.mxu0 %vm2469_vm0, %v2468_v0 }
 0xb3e   : > { %v1147_v16 = vpop.f32.mrb[20].mxu0 }
 0xb3f   : > { %v1148_v17 = vadd.f32 %v1147_v16, %v1097_v8  ;;  %v2175_v18 = vpop.f32.mrb[21].mxu0 }
 0xb40   : > { %v1150_v19 = vpop.f32.mrb[22].mxu0 }
 0xb41   : > { %1157 = vrot.lane.b32.xlu0 %v1148_v17, %s2472_s14  ;;  %1154 = vrot.lane.b32.xlu1 %v1148_v17, %s2471_s11  ;;  %v2176_v20 = vpop.f32.mrb[23].mxu0  ;;  %v2841_v3 = vpack.c.bf16 %v1148_v17, %v1148_v17 }
 0xb45   : > { %1160 = vrot.lane.b32.xlu1 %v1148_v17, %s2470_s13 }
 0xb49   : > { %1168 = vrot.lane.b32.xlu1 %v2841_v3, %s2473_s15 }
 0xbb3   : > { %v1158_v23 = vpop.permute.xlu0 %1157  ;;  %v1155_v24 = vpop.permute.xlu1 %1154 }
 0xbb4   : > { %v2845_v25 = vpack.c.bf16 %v1158_v23, %v1158_v23  ;;  %v1164_v7 = vpack.c.bf16 %v1155_v24, %v1155_v24 }
 0xbb6   : > { %1217 = vrot.lane.b32.xlu0 %v1164_v7, %s2473_s15  ;;  %1266 = vrot.lane.b32.xlu1 %v2845_v25, %s2473_s15 }
 0xbb7   : > { %v1161_v26 = vpop.permute.xlu1 %1160 }
 0xbb8   : > { %v2850_v28 = vpack.c.bf16 %v1161_v26, %v1161_v26 }
 0xbba   : > { %1315 = vrot.lane.b32.xlu0 %v2850_v28, %s2473_s15 }
 0xbbb   : > { %v1169_v29 = vpop.permute.xlu1 %1168 }
 0xbbc   : > { %v1174_v21 = vsel %vm368_vm2, %v1169_v29, 0 }
 0xbbd   : > { %2178 = vmatpush3.bf16.xpose.msra.mxu0 %v1174_v21 }
 0xbbe   : > { %2189 = vmatprep.subr.bf16.mxu0 %v2468_v0 }
 0xbc4   : > { %2180 = vmatmul.mubr.msk.bf16.vlgmr.msra.gmra.mrb[24].mxu0 %vm368_vm2, %v2841_v3 }
 0xbc5   : > { %2191 = vmatprep.mubr.msk.bf16.mxu0 %vm2469_vm0, %v2468_v0 }
 0xc28   : > { %v1218_v30 = vpop.permute.xlu0 %1217  ;;  %v1267_v31 = vpop.permute.xlu1 %1266 }
 0xc29   : > { %v1223_v32 = vsel %vm368_vm2, %v1218_v30, 0  ;;  %v1272_v33 = vsel %vm368_vm2, %v1267_v31, 0 }
 0xc2a   : > { %2184 = vmatpush3.bf16.xpose.msra.mxu1 %v1223_v32  ;;  %2190 = vmatpush3.bf16.xpose.msra.mxu0 %v1272_v33 }
 0xc2b   : > { %2195 = vmatprep.subr.bf16.mxu1 %v2468_v0  ;;  %2201 = vmatprep.subr.bf16.mxu0 %v2468_v0 }
 0xc2c   : > { %v1316_v34 = vpop.permute.xlu0 %1315 }
 0xc2d   : > { %v1321_v35 = vsel %vm368_vm2, %v1316_v34, 0 }
 0xc31   : > { %2186 = vmatmul.mubr.msk.bf16.vlgmr.msra.gmra.mrb[28].mxu1 %vm368_vm2, %v1164_v7  ;;  %2192 = vmatmul.mubr.msk.bf16.vlgmr.msra.gmra.mrb[28].mxu0 %vm368_vm2, %v2845_v25 }
 0xc32   : > { %2196 = vmatpush3.bf16.xpose.msra.mxu1 %v1321_v35  ;;  %2197 = vmatprep.mubr.msk.bf16.mxu1 %vm2469_vm0, %v2468_v0 }
 0xc33   : > { %2207 = vmatprep.subr.bf16.mxu1 %v2468_v0  ;;  %2203 = vmatprep.mubr.msk.bf16.mxu0 %vm2469_vm0, %v2468_v0 }
 0xc39   : > { %2198 = vmatmul.mubr.msk.bf16.vlgmr.msra.gmra.mrb[32].mxu1 %vm368_vm2, %v2850_v28 }
 0xc3a   : > { %2209 = vmatprep.mubr.msk.bf16.mxu1 %vm2469_vm0, %v2468_v0 }
 0xc97   : > { %v1210_v37 = vpop.f32.mrb[24].mxu0 }
 0xc98   : > { %v1363_v38 = vmul.f32 0.35355338, %v1210_v37  ;;  %v2181_v39 = vpop.f32.mrb[25].mxu0 }
 0xc99   : > { %v1213_v40 = vpop.f32.mrb[26].mxu0 }
 0xc9a   : > { %v2182_v41 = vpop.f32.mrb[27].mxu0  ;;  %v1367_v42 = vsel %vm368_vm2, %v1363_v38, -inf }
 0xc9b   : > { %1368 = vmax.xlane.f32.xlu1 %v1367_v42 }
 0xd04   : > { %v1259_v43 = vpop.f32.mrb[28].mxu1  ;;  %v1308_v44 = vpop.f32.mrb[28].mxu0 }
 0xd05   : > { %v1364_v46 = vmul.f32 0.35355338, %v1259_v43  ;;  %v2187_v47 = vpop.f32.mrb[29].mxu1  ;;  %v2193_v48 = vpop.f32.mrb[29].mxu0  ;;  %v1365_v51 = vmul.f32 0.35355338, %v1308_v44 }
 0xd06   : > { %v1262_v49 = vpop.f32.mrb[30].mxu1  ;;  %v1311_v50 = vpop.f32.mrb[30].mxu0 }
 0xd07   : > { %v2188_v52 = vpop.f32.mrb[31].mxu1  ;;  %v2194_v53 = vpop.f32.mrb[31].mxu0  ;;  %v1370_v54 = vsel %vm368_vm2, %v1364_v46, -inf  ;;  %v1373_v55 = vsel %vm368_vm2, %v1365_v51, -inf }
 0xd08   : > { %1371 = vmax.xlane.f32.xlu0 %v1370_v54 }
 0xd0c   : > { %1374 = vmax.xlane.f32.xlu0 %v1373_v55  ;;  %v1357_v56 = vpop.f32.mrb[32].mxu1 }
 0xd0d   : > { %v1366_v57 = vmul.f32 0.35355338, %v1357_v56  ;;  %v2199_v58 = vpop.f32.mrb[33].mxu1 }
 0xd0e   : > { %v1360_v59 = vpop.f32.mrb[34].mxu1  ;;  %v2322_v58 = vld [vmem:[%s3032_s2 + $0x18] sm:$0xff]  }
 0xd0f   : > { %v2200_v60 = vpop.f32.mrb[35].mxu1  ;;  %v1376_v61 = vsel %vm368_vm2, %v1366_v57, -inf }
 0xd10   : > { %1377 = vmax.xlane.f32.xlu1 %v1376_v61 }
 0xd21   : > { %1463 = vrot.lane.b32.xlu1 %v1164_v7, %s2474_s17 }
 0xd22   : > { %1415 = vrot.lane.b32.xlu0 %v2841_v3, %s2474_s17 }
 0xd28   : > { %v1369_v62 = vpop.xlane.xlu1 %1368 }
 0xd29   : > { %v1379_v63 = vsub.f32 %v1363_v38, %v1369_v62 }
 0xd2b   : > { %v1383_v5 = vmul.f32 1.442695, %v1379_v63 }
 0xd2d   : > { %2349 = vpow2.f32 %v1383_v5 }
 0xd37   : > { %v2350_v9 = vpop.eup %2349 }
 0xd38   : > { %v1391_v10 = vsel %vm368_vm2, %v2350_v9, 0.0 }
 0xd41   : > { %1392 = vadd.xlane.f32.xlu0 %v1391_v10 }
 0xd95   : > { %v1372_v11 = vpop.xlane.xlu0 %1371 }
 0xd96   : > { %v1380_v12 = vsub.f32 %v1364_v46, %v1372_v11 }
 0xd98   : > { %v1385_v14 = vmul.f32 1.442695, %v1380_v12 }
 0xd99   : > { %v1375_v8 = vpop.xlane.xlu0 %1374 }
 0xd9a   : > { %2351 = vpow2.f32 %v1385_v14  ;;  %v1381_v16 = vsub.f32 %v1365_v51, %v1375_v8 }
 0xd9c   : > { %v1387_v17 = vmul.f32 1.442695, %v1381_v16 }
 0xd9d   : > { %v1416_v18 = vpop.permute.xlu0 %1415  ;;  %v1378_v19 = vpop.xlane.xlu1 %1377 }
 0xd9e   : > { %2353 = vpow2.f32 %v1387_v17  ;;  %v1421_v20 = vsel %vm619_vm3, %v1416_v18, 0  ;;  %v1382_v3 = vsub.f32 %v1366_v57, %v1378_v19  ;;  %v2321_v57 = vld [vmem:[%s3032_s2 + $0x10] sm:$0xff]  }
 0xd9f   : > { %2202 = vmatpush3.bf16.msra.mxu0 %v1421_v20 }
 0xda0   : > { %v1389_v23 = vmul.f32 1.442695, %v1382_v3  ;;  %2213 = vmatprep.subr.bf16.mxu0 %v2468_v0 }
 0xda1   : > { %v1464_v24 = vpop.permute.xlu1 %1463 }
 0xda2   : > { %2355 = vpow2.f32 %v1389_v23  ;;  %v1469_v7 = vsel %vm619_vm3, %v1464_v24, 0  ;;  %v1626_v24 = vrot.slane %v2833_v15, %v827_v1  ;;  %v2323_v1 = vld [vmem:[%s3033_s3 + $0x10] sm:$0xff]  }
 0xda3   : > { %2208 = vmatpush3.bf16.msra.mxu1 %v1469_v7 }
 0xda4   : > { %v2352_v26 = vpop.eup %2351  ;;  %2219 = vmatprep.subr.bf16.mxu1 %v2468_v0 }
 0xda5   : > { %v1394_v29 = vsel %vm368_vm2, %v2352_v26, 0.0 }
 0xda6   : > { %1395 = vadd.xlane.f32.xlu1 %v1394_v29 }
 0xda8   : > { %v2354_v21 = vpop.eup %2353 }
 0xda9   : > { %v1397_v30 = vsel %vm368_vm2, %v2354_v21, 0.0 }
 0xdaa   : > { %1398 = vadd.xlane.f32.xlu0 %v1397_v30 }
 0xdac   : > { %v2356_v31 = vpop.eup %2355 }
 0xdad   : > { %v1400_v32 = vsel %vm368_vm2, %v2356_v31, 0.0 }
 0xdae   : > { %1401 = vadd.xlane.f32.xlu1 %v1400_v32 }
 0xdbf   : > { %1511 = vrot.lane.b32.xlu1 %v2845_v25, %s2474_s17 }
 0xdc0   : > { %1559 = vrot.lane.b32.xlu0 %v2850_v28, %s2474_s17  ;;  %s3048_s17 = smov 16  }
 0xdce   : > { %v1393_v33 = vpop.xlane.xlu0 %1392 }
 0xdcf   : > { %2357 = vrcp.f32 %v1393_v33 }
 0xdd9   : > { %v2358_v34 = vpop.eup %2357 }
 0xdda   : > { %v1407_v35 = vmul.f32 %v2358_v34, %v2350_v9 }
 0xddc   : > { %v1411_v37 = vpack.c.bf16 %v1407_v35, %v1407_v35 }
 0xdde   : > { %2204 = vmatmul.mubr.msk.bf16.vlgmr.msra.gmra.mrb[32].mxu0 %vm368_vm2, %v1411_v37 }
 0xddf   : > { %2215 = vmatprep.mubr.msk.bf16.mxu0 %vm2469_vm0, %v2468_v0 }
 0xe33   : > { %v1396_v38 = vpop.xlane.xlu1 %1395 }
 0xe34   : > { %2359 = vrcp.f32 %v1396_v38 }
 0xe37   : > { %v1399_v39 = vpop.xlane.xlu0 %1398 }
 0xe38   : > { %2361 = vrcp.f32 %v1399_v39  ;;  %v2324_v39 = vld [vmem:[%s3033_s3 + $0x18] sm:$0xff]  }
 0xe3b   : > { %v1402_v40 = vpop.xlane.xlu1 %1401  ;;  %v1560_v28 = vpop.permute.xlu0 %1559 }
 0xe3c   : > { %2363 = vrcp.f32 %v1402_v40  ;;  %v1565_v48 = vsel %vm619_vm3, %v1560_v28, 0  ;;  %v2326_v40 = vld [vmem:[%s3034_s4 + $0x28] sm:$0xff]   ;;  %v1699_v28 = vrot.slane %v2833_v15, %v901_v27  ;;  %v2328_v27 = vld [vmem:[%s3034_s4 + $0x38] sm:$0xff]  }
 0xe3e   : > { %v2360_v25 = vpop.eup %2359 }
 0xe3f   : > { %v1408_v41 = vmul.f32 %v2360_v25, %v2352_v26  ;;  %v1512_v42 = vpop.permute.xlu1 %1511 }
 0xe40   : > { %v1517_v43 = vsel %vm619_vm3, %v1512_v42, 0 }
 0xe41   : > { %2214 = vmatpush3.bf16.msra.mxu0 %v1517_v43  ;;  %v1412_v44 = vpack.c.bf16 %v1408_v41, %v1408_v41 }
 0xe42   : > { %v2362_v46 = vpop.eup %2361  ;;  %2225 = vmatprep.subr.bf16.mxu0 %v2468_v0 }
 0xe43   : > { %v1409_v47 = vmul.f32 %v2362_v46, %v2354_v21  ;;  %2210 = vmatmul.mubr.msk.bf16.vlgmr.msra.gmra.mrb[36].mxu1 %vm368_vm2, %v1412_v44  ;;  %v1704_v46 = vrot.slane %v2833_v15, %v906_v22  ;;  %v1710_v22 = vrot.slane %v2833_v15, %v912_v36 }
 0xe44   : > { %2220 = vmatpush3.bf16.msra.mxu1 %v1565_v48  ;;  %2221 = vmatprep.mubr.msk.bf16.mxu1 %vm2469_vm0, %v2468_v0 }
 0xe45   : > { %v1413_v49 = vpack.c.bf16 %v1409_v47, %v1409_v47  ;;  %2233 = vmatprep.subr.bf16.mxu1 %v2468_v0 }
 0xe46   : > { %v2364_v50 = vpop.eup %2363 }
 0xe47   : > { %v1410_v51 = vmul.f32 %v2364_v50, %v2356_v31  ;;  %2216 = vmatmul.mubr.msk.bf16.vlgmr.msra.gmra.mrb[36].mxu0 %vm368_vm2, %v1413_v49  ;;  %v2327_v50 = vld [vmem:[%s3034_s4 + $0x30] sm:$0xff]  }
 0xe48   : > { %2229 = vmatprep.mubr.msk.bf16.mxu0 %vm2469_vm0, %v2468_v0  ;;  %2226 = vmatpush3.bf16.msra.mxu0 %v2321_v57 }
 0xe49   : > { %v1414_v52 = vpack.c.bf16 %v1410_v51, %v1410_v51  ;;  %2227 = vmatprep.subr.bf16.mxu0 %v2468_v0 }
 0xe4b   : > { %2222 = vmatmul.mubr.msk.bf16.vlgmr.msra.gmra.mrb[40].mxu1 %vm368_vm2, %v1414_v52 }
 0xe4c   : > { %2237 = vmatprep.mubr.msk.bf16.mxu1 %vm2469_vm0, %v2468_v0  ;;  %2228 = vmatpush3.bf16.msra.mxu0 %v2322_v58 }
 0xe4d   : > { %2241 = vmatprep.subr.bf16.mxu0 %v2468_v0  ;;  %2234 = vmatpush3.bf16.msra.mxu1 %v2323_v1 }
 0xe4e   : > { %2235 = vmatprep.subr.bf16.mxu1 %v2468_v0 }
 0xe51   : > { %2236 = vmatpush3.bf16.msra.mxu1 %v2324_v39 }
 0xeb1   : > { %v1457_v53 = vpop.f32.mrb[32].mxu0 }
 0xeb2   : > { %v2205_v54 = vpop.f32.mrb[33].mxu0 }
 0xeb3   : > { %v1460_v55 = vpop.f32.mrb[34].mxu0 }
 0xeb4   : > { %v2206_v56 = vpop.f32.mrb[35].mxu0 }
 0xf16   : > { %v1505_v59 = vpop.f32.mrb[36].mxu1 }
 0xf17   : > { %1608 = vrot.lane.b32.xlu1 %v1505_v59, %s2475_s20  ;;  %v2211_v60 = vpop.f32.mrb[37].mxu1 }
 0xf18   : > { %v1508_v61 = vpop.f32.mrb[38].mxu1 }
 0xf19   : > { %v2212_v62 = vpop.f32.mrb[39].mxu1 }
 0xf1a   : > { %v1553_v63 = vpop.f32.mrb[36].mxu0 }
 0xf1b   : > { %1612 = vrot.lane.b32.xlu0 %v1553_v63, %s3048_s17  ;;  %v2217_v5 = vpop.f32.mrb[37].mxu0  ;;  %s2022_s17 = sshll.u32 %s2535_s25, 7  ;;  %s2478_s25 = smov [#allocation5]  }
 0xf1c   : > { %v1556_v9 = vpop.f32.mrb[38].mxu0  ;;  %s2985_s16 = scalar_lea.hbm %s3036_s6, %s2022_s17  ;;  %s2403_s8 = sshll.u32 %s2478_s25, 4  ;;  %s2404_s8 = int_to_ptr.vmem [resolvable:$false] %s2403_s8 }
 0xf1d   : > { %v2218_v10 = vpop.f32.mrb[39].mxu0  ;;  %s2405_s13 = scalar_lea.vmem %s2404_s8, 256 }
 0xf1e   : > { %v1601_v11 = vpop.f32.mrb[40].mxu1 }
 0xf1f   : > { %1616 = vrot.lane.b32.xlu1 %v1601_v11, %s3049_s7  ;;  %v2223_v12 = vpop.f32.mrb[41].mxu1  ;;  %s3050_s7 = sshll.u32 %s2619_s26, 3 }
 0xf20   : > { %v1604_v14 = vpop.f32.mrb[42].mxu1  ;;  %s266_s20 = scalar_lea.vmem [#allocation5], %s3050_s7 }
 0xf21   : > { %v2224_v8 = vpop.f32.mrb[43].mxu1  ;;  %s1878_s12 = sshll.u32 %s266_s20, 4  ;;  %s2987_s12 = int_to_ptr.vmem [resolvable:$true] %s1878_s12 }
 0xf22   : > { %s2399_s28 = scalar_lea.vmem %s2987_s12, 128  ;;  %p2406_p7 = scmp.lt.s32.totalorder %s2987_s12, %s2404_s8 }
 0xf23   : > { %p2400_p6 = scmp.ne.s32.totalorder %s2987_s12, %s2399_s28  ;;  %p2407_p10 = scmp.lt.s32.totalorder %s2405_s13, %s2399_s28 }
 0xf25   : > { %p2401_p12 = pnand %p2400_p6, %p3051_p11  ;;  %p2408_p2 = por %p2407_p10, %p2406_p7 }
 0xf27   : > { %p2402_p13 = pneg %p2401_p12 }
 0xf29   : > { %p2409_p4 = pnand %p2408_p2, %p2402_p13 }
 0xf89   : > { %v1609_v16 = vpop.permute.xlu1 %1608 }
 0xf8a   : > { %v1619_v18 = vsel %vm368_vm2, %v1457_v53, %v1609_v16  ;;  %v1856_v16 = vrot.slane %v2833_v15, %v1059_v2 }
 0xf8d   : > { %v1613_v17 = vpop.permute.xlu0 %1612 }
 0xf8e   : > { %v1620_v19 = vsel %vm820_vm4, %v1619_v18, %v1613_v17 }
 0xf91   : > { %v1617_v20 = vpop.permute.xlu1 %1616 }
 0xf92   : > { %v1621_v3 = vsel %vm822_vm5, %v1620_v19, %v1617_v20  ;;  %v1861_v19 = vrot.slane %v2833_v15, %v1064_v4 }
 0xf93   : > { %v1622_v23 = vpack.c.bf16 %v1621_v3, %v1621_v3 }
 0xf95   : > { %2230 = vmatmul.mubr.msk.bf16.vlgmr.msra.gmra.mrb[40].mxu0 %vm307_vm1, %v1622_v23 }
 0xf96   : > { %2249 = vmatprep.mubr.msk.bf16.mxu0 %vm2469_vm0, %v2468_v0 }
0x1068   : > { %v1676_v7 = vpop.f32.mrb[40].mxu0 }
0x1069   : > { %v1677_v26 = vadd.f32 %v1676_v7, %v1626_v24  ;;  %v2231_v29 = vpop.f32.mrb[41].mxu0 }
0x106a   : > { %v1679_v21 = vpop.f32.mrb[42].mxu0 }
0x106b   : > { %v2232_v30 = vpop.f32.mrb[43].mxu0  ;;  %v1682_v31 = vadd.f32 %v1677_v26, %v2823_v13  ;;  %v2325_v13 = vld [vmem:[%s3034_s4 + $0x20] sm:$0xff]  }
0x106c   : > { %2242 = vmatpush3.bf16.msra.mxu0 %v2325_v13 }
0x106d   : > { %v1683_v32 = vsel %vm307_vm1, %v1682_v31, 0.0  ;;  %2243 = vmatprep.subr.bf16.mxu0 %v2468_v0 }
0x106e   : > { %1684 = vadd.xlane.f32.xlu0 %v1683_v32 }
0x1070   : > { %2244 = vmatpush3.bf16.msra.mxu0 %v2326_v40 }
0x1071   : > { %2245 = vmatprep.subr.bf16.mxu0 %v2468_v0 }
0x1074   : > { %2246 = vmatpush3.bf16.msra.mxu0 %v2327_v50 }
0x1075   : > { %2247 = vmatprep.subr.bf16.mxu0 %v2468_v0  ;;  %v1771_v0 = vrot.slane %v2833_v15, %v973_v45 }
0x1078   : > { %2248 = vmatpush3.bf16.msra.mxu0 %v2328_v27 }
0x10fb   : > { %v1685_v33 = vpop.xlane.xlu0 %1684 }
0x10fc   : > { %v1686_v34 = vmul.f32 0.03125, %v1685_v33 }
0x10fe   : > { %v1687_v35 = vsub.f32 %v1682_v31, %v1686_v34 }
0x1100   : > { %v1688_v37 = vmul.f32 %v1687_v35, %v1687_v35 }
0x1102   : > { %v1689_v38 = vsel %vm307_vm1, %v1688_v37, 0.0 }
0x1103   : > { %1690 = vadd.xlane.f32.xlu1 %v1689_v38 }
0x1190   : > { %v1691_v25 = vpop.xlane.xlu1 %1690 }
0x1191   : > { %v1692_v41 = vmul.f32 0.03125, %v1691_v25 }
0x1193   : > { %v1693_v42 = vadd.f32 1e-05, %v1692_v41 }
0x1195   : > { %2365 = vrsqrt.f32 %v1693_v42 }
0x119f   : > { %v2366_v43 = vpop.eup %2365 }
0x11a0   : > { %v1695_v44 = vmul.f32 %v2366_v43, %v1687_v35 }
0x11a2   : > { %v1700_v47 = vmul.f32 %v1699_v28, %v1695_v44 }
0x11a4   : > { %v1705_v48 = vadd.f32 %v1704_v46, %v1700_v47 }
0x11a6   : > { %v1706_v49 = vpack.c.bf16 %v1705_v48, %v1705_v48 }
0x11a8   : > { %2238 = vmatmul.mubr.msk.bf16.vlgmr.msra.gmra.mrb[44].mxu1 %vm307_vm1, %v1706_v49 }
0x127b   : > { %v1760_v51 = vpop.f32.mrb[44].mxu1 }
0x127c   : > { %v1761_v52 = vadd.f32 %v1760_v51, %v1710_v22  ;;  %v2239_v53 = vpop.f32.mrb[45].mxu1 }
0x127d   : > { %v1763_v54 = vpop.f32.mrb[46].mxu1 }
0x127e   : > { %v1766_v55 = vmax.f32 %v1761_v52, 0.0  ;;  %v2240_v56 = vpop.f32.mrb[47].mxu1 }
0x1280   : > { %v1767_v57 = vpack.c.bf16 %v1766_v55, %v1766_v55 }
0x1282   : > { %2250 = vmatmul.mubr.msk.bf16.vlgmr.msra.gmra.mrb[44].mxu0 %vm999_vm6, %v1767_v57 }
0x1355   : > { %v1833_v58 = vpop.f32.mrb[44].mxu0 }
0x1356   : > { %v1834_v59 = vadd.f32 %v1833_v58, %v1771_v0  ;;  %v2251_v60 = vpop.f32.mrb[45].mxu0 }
0x1357   : > { %v1836_v61 = vpop.f32.mrb[46].mxu0 }
0x1358   : > { %v2252_v62 = vpop.f32.mrb[47].mxu0  ;;  %v1839_v63 = vadd.f32 %v1834_v59, %v1705_v48 }
0x135a   : > { %v1840_v36 = vsel %vm307_vm1, %v1839_v63, 0.0 }
0x135b   : > { %1841 = vadd.xlane.f32.xlu0 %v1840_v36 }
0x13e8   : > { %v1842_v5 = vpop.xlane.xlu0 %1841 }
0x13e9   : > { %v1843_v9 = vmul.f32 0.03125, %v1842_v5 }
0x13eb   : > { %v1844_v10 = vsub.f32 %v1839_v63, %v1843_v9 }
0x13ed   : > { %v1845_v11 = vmul.f32 %v1844_v10, %v1844_v10 }
0x13ef   : > { %v1846_v12 = vsel %vm307_vm1, %v1845_v11, 0.0 }
0x13f0   : > { %1847 = vadd.xlane.f32.xlu0 %v1846_v12 }
0x147d   : > { %v1848_v14 = vpop.xlane.xlu0 %1847 }
0x147e   : > { %v1849_v45 = vmul.f32 0.03125, %v1848_v14 }
0x1480   : > { %v1850_v8 = vadd.f32 1e-05, %v1849_v45 }
0x1482   : > { %2367 = vrsqrt.f32 %v1850_v8 }
0x148c   : > { %v2368_v17 = vpop.eup %2367 }
0x148d   : > { %v1852_v18 = vmul.f32 %v2368_v17, %v1844_v10 }
0x148f   : > { %v1857_v20 = vmul.f32 %v1856_v16, %v1852_v18 }
0x1491   : > { %v1862_v3 = vadd.f32 %v1861_v19, %v1857_v20 }
0x1493   : > { %1863 = vst.msk [vmem:[%s266_s20] sm:$0xff] %vm307_vm1, %v1862_v3 }
0x1494   : > { %2412 = shalt.err (!%p2409_p4)
}
0x1495   : > { %s2413_s26 = scalar_lea.hbm %s2985_s16, 128  ;;  %s2417_s15 = scalar_lea.hbm %s3036_s6, 256 }
0x1496   : > { %p2414_p5 = scmp.ne.s32.totalorder %s2985_s16, %s2413_s26  ;;  %p2418_p0 = scmp.lt.u32.totalorder %s2985_s16, %s3036_s6 }
0x1497   : > { %p2419_p1 = scmp.lt.u32.totalorder %s2417_s15, %s2413_s26  ;;  %p2421_p6 = scmp.lt.u32.totalorder %s2413_s26, %s2985_s16 }
0x1498   : > { %p2415_p8 = pnand %p2414_p5, %p3051_p11 }
0x1499   : > { %p2420_p3 = por %p2419_p1, %p2418_p0 }
0x149a   : > { %p2416_p9 = pneg %p2415_p8 }
0x149b   : > { %p2422_p12 = por %p2421_p6, %p2420_p3 }
0x149d   : > { %p2423_p13 = pnand %p2422_p12, %p2416_p9 }
0x149f   : > { %2426 = shalt.err (!%p2423_p13)
}
0x14a0   : > { %2255 = dma.vmem_to_hbm [thread:$0]  (%p3051_p11), %s2987_s12, 128, %s2985_s16, %s1865_s18  }
0x14a1 PF: > { %s1890_s20 = sand.u32 1, %s2453_s21   ;;  %p3052_p7 = scmp.ne.s32.totalorder %s3044_s10, 0 }
0x14a2   : > { %p3053_p10 = scmp.ge.s32.totalorder %s2465_s24, 2  ;;  %s1891_s29 = scalar_lea.sflag [#allocation4], %s1890_s20 }
0x14a4   : > { %p2262_p2 = pnand %p3053_p10, %p3052_p7 }
0x14a6   : > { %2448 = dma.done.wait (!%p2262_p2), %s1891_s29, 128  }
0x14a7   : > { %2450 = vsyncadd (!%p2262_p2), %s1891_s29, 4294967168  ;;  %p19_p4 = scmp.ge.s32.totalorder %s2539_s27, 4   ;;  %s3054_s21 = smov %s2457_s22 }
0x14a8   : > { %s3055_s22 = smov %s2461_s23  ;;  %s3056_s23 = smov %s2551_s30 }
0x14a9   : > { %s3057_s24 = smov %s2539_s27  ;;  %21 = sbr.rel (!%p19_p4) target bundleno = 5 (0x5), region = 94 }
0x14b0   :  { %1896 = vsyncpa [#allocation3], 1 }
0x14b1   :  { %1898 = vsyncpa [#allocation3 + $0x1], 1 }
0x14b2   :  { %1899 = vsyncpa [#allocation4], 1 }
0x14b3   :  { %1901 = vsyncpa [#allocation4 + $0x1], 1 }

</bundles_post_ra>
